<compile_context>
chip_gen: v5e
topology: v5e:2x2
jax: 0.10.0
libtpu: 0.0.40
codegen_flags: <defaults>
</compile_context>

<pallas_src>
import functools
import math

import jax
import jax.numpy as jnp
from jax import lax
from jax.experimental import pallas as pl
from jax.experimental.pallas import tpu as pltpu


# -----------------------------------------------------------------------------
# Kernel
# -----------------------------------------------------------------------------
def _transformer_block_kernel(
    # inputs
    x_ref,      # (Bb, S, D)    f32
    g1_ref,     # (1, D)        f32
    wq_ref,     # (H, D, Dh)    bf16  half-split RoPE column order, 1/sqrt(Dh) folded in
    wk_ref,     # (H, D, Dh)    bf16  half-split RoPE column order
    wv_ref,     # (H, D, Dh)    bf16
    wo_ref,     # (H, Dh, D)    bf16
    g2_ref,     # (1, D)        f32
    w1_ref,     # (D, Ft)       bf16  FFN column chunk
    w3_ref,     # (D, Ft)       bf16  FFN column chunk
    w2_ref,     # (Ft, D)       bf16  FFN row chunk
    cos_ref,    # (1|Bb, S, Dh) f32   half-split RoPE table
    sin_ref,    # (1|Bb, S, Dh) f32
    # outputs
    o_ref,      # (Bb, S, D)    f32
    # scratch
    qh_scr,     # (Bb*S, Dh)    f32   current head q projection
    kh_scr,     # (Bb*S, Dh)    f32
    vh_scr,     # (Bb*S, Dh)    f32
    ho_scr,     # (Bb*S, Dh)    bf16  current head attention output (bf16 slab)
    attn_scr,   # (Bb*S, D)     f32   sum_h head_out @ wo[h]
    y1_scr,     # (Bb*S, D)     f32   first residual (kept across FFN chunks)
    h2_scr,     # (Bb*S, D)     bf16  RMSNorm2(y1), FFN input
    acc_scr,    # (Bb*S, D)     f32   FFN accumulator across F chunks
    *,
    num_heads: int,
    d_head: int,
    batch_block: int,
    eps: float,
    shared_rope: bool,
):
    f32 = jnp.float32
    bf16 = jnp.bfloat16
    Bb = batch_block
    S = x_ref.shape[1]
    D = x_ref.shape[2]
    half = d_head // 2

    f_idx = pl.program_id(1)
    n_f = pl.num_programs(1)

    # ---- attention + both RMSNorms: once per batch block (first FFN chunk) ----
    @pl.when(f_idx == 0)
    def _attention_and_norms():
        x = x_ref[...].reshape(Bb * S, D)                          # f32
        ms = jnp.mean(x * x, axis=-1, keepdims=True)
        h16 = (x * lax.rsqrt(ms + eps) * g1_ref[0]).astype(bf16)

        row = lax.broadcasted_iota(jnp.int32, (S, S), 0)
        col = lax.broadcasted_iota(jnp.int32, (S, S), 1)
        causal = row >= col
        neg_big = jnp.float32(-1e30)        # finite: robust to fully-masked rows

        cos_all = cos_ref[0] if shared_rope else None
        sin_all = sin_ref[0] if shared_rope else None

        attn_scr[...] = jnp.zeros_like(attn_scr)

        def head_body(hd, carry):
            # Per-head projections: dynamic index only on the leading head axis.
            qh_scr[...] = jnp.dot(h16, wq_ref[hd], preferred_element_type=f32)
            kh_scr[...] = jnp.dot(h16, wk_ref[hd], preferred_element_type=f32)
            vh_scr[...] = jnp.dot(h16, wv_ref[hd], preferred_element_type=f32)

            def batch_body(b, c):
                r0 = pl.multiple_of(b * S, S)                      # sublane offset
                qh = qh_scr[pl.ds(r0, S), :]                       # (S, Dh) f32
                kh = kh_scr[pl.ds(r0, S), :]
                vh = vh_scr[pl.ds(r0, S), :]
                cos = cos_all if shared_rope else cos_ref[b]
                sin = sin_all if shared_rope else sin_ref[b]

                # RoPE in half-split layout: rotation = [-second_half, first_half]
                q_rot = jnp.concatenate([-qh[:, half:], qh[:, :half]], axis=-1)
                k_rot = jnp.concatenate([-kh[:, half:], kh[:, :half]], axis=-1)
                qh = qh * cos + q_rot * sin      # 1/sqrt(Dh) already folded into wq
                kh = kh * cos + k_rot * sin

                s = lax.dot_general(qh.astype(bf16), kh.astype(bf16),
                                    (((1,), (1,)), ((), ())),
                                    preferred_element_type=f32)    # (S, S)
                s = jnp.where(causal, s, neg_big)
                m = jnp.max(s, axis=-1, keepdims=True)
                p = jnp.exp(s - m)
                l = jnp.sum(p, axis=-1, keepdims=True)
                head = jnp.dot(p.astype(bf16), vh.astype(bf16),
                               preferred_element_type=f32)         # (S, Dh)
                head = head * (1.0 / l)          # deferred, exact normalization
                ho_scr[pl.ds(r0, S), :] = head.astype(bf16)
                return c

            lax.fori_loop(0, Bb, batch_body, 0)

            # Output projection accumulated per head: no (Bb*S, D) head concat.
            attn_scr[...] += jnp.dot(ho_scr[...], wo_ref[hd],
                                     preferred_element_type=f32)
            return carry

        lax.fori_loop(0, num_heads, head_body, 0)

        y1 = x + attn_scr[...]                                     # residual 1
        y1_scr[...] = y1
        ms2 = jnp.mean(y1 * y1, axis=-1, keepdims=True)
        h2_scr[...] = (y1 * lax.rsqrt(ms2 + eps) * g2_ref[0]).astype(bf16)
        acc_scr[...] = jnp.zeros_like(acc_scr)

    # ---- SwiGLU FFN chunk (every grid step, streaming F) ----
    h2 = h2_scr[...]
    a = jnp.dot(h2, w1_ref[...], preferred_element_type=f32)       # (Bb*S, Ft)
    g = jnp.dot(h2, w3_ref[...], preferred_element_type=f32)
    silu = a * (0.5 * (jnp.tanh(0.5 * a) + 1.0))                   # sigmoid via one tanh
    acc_scr[...] += jnp.dot((silu * g).astype(bf16), w2_ref[...],
                            preferred_element_type=f32)

    @pl.when(f_idx == n_f - 1)
    def _write_out():
        o_ref[...] = (y1_scr[...] + acc_scr[...]).reshape(Bb, S, D)   # residual 2


# -----------------------------------------------------------------------------
# Wrapper helpers
# -----------------------------------------------------------------------------
def make_rope_tables_halfsplit(token_positions, d_head, theta):
    """cos/sin of shape (P, S, d_head) in half-split order (first half = freq k)."""
    pos = token_positions.astype(jnp.float32)                      # (P, S)
    k = jnp.arange(d_head // 2, dtype=jnp.float32)
    inv_freq = 1.0 / (theta ** (2.0 * k / d_head))                 # (Dh/2,)
    ang = pos[..., None] * inv_freq                                # (P, S, Dh/2)
    cos = jnp.concatenate([jnp.cos(ang), jnp.cos(ang)], axis=-1)
    sin = jnp.concatenate([jnp.sin(ang), jnp.sin(ang)], axis=-1)
    return cos, sin


def _choose_ffn_tile(d_ff):
    """Full F for small problems; else the largest 128-multiple divisor <= 2048."""
    if d_ff <= 2048:
        return d_ff
    for t in (2048, 1024, 512, 256, 128):
        if d_ff % t == 0:
            return t
    return d_ff


def _choose_batch_block(batch, seq, d_model):
    """Largest divisor of B giving ~<=256 MXU rows and modest activation slabs."""
    if seq % 8 != 0:
        return 1
    best = 1
    for cand in range(1, batch + 1):
        if batch % cand:
            continue
        if cand * seq <= max(256, seq) and cand * seq * d_model * 4 <= 8 * 1024 * 1024:
            best = cand
    return best


def _vmem_limit_bytes():
    """Physical VMEM per core minus headroom for Mosaic internal scratch."""
    cap = 128 * 1024 * 1024
    try:
        cap = int(getattr(pltpu.get_tpu_info(), "vmem_capacity_bytes", cap))
    except Exception:
        pass
    return max(16 * 1024 * 1024, cap - 12 * 1024 * 1024)


def init_params(key, d_model, d_ff):
    ks = jax.random.split(key, 10)

    def tn(k, shape, std):
        return jnp.clip(jax.random.normal(k, shape) * std, -3.0 * std, 3.0 * std)

    s_d = 1.0 / math.sqrt(d_model)
    s_f = 1.0 / math.sqrt(d_ff)
    return {
        "g1": tn(ks[0], (1, d_model), 1.0),
        "wq": tn(ks[1], (d_model, d_model), s_d),
        "wk": tn(ks[2], (d_model, d_model), s_d),
        "wv": tn(ks[3], (d_model, d_model), s_d),
        "wo": tn(ks[4], (d_model, d_model), s_d),
        "g2": tn(ks[5], (1, d_model), 1.0),
        "w1": tn(ks[6], (d_model, d_ff), s_d),
        "w3": tn(ks[7], (d_model, d_ff), s_d),
        "w2": tn(ks[8], (d_ff, d_model), s_f),
    }


def _transformer_block_pallas(x, params, num_heads, theta, token_positions,
                              single_buffer_invariants):
    B, S, D = x.shape
    d_head = D // num_heads
    F = params["w1"].shape[1]
    half_perm = jnp.concatenate(
        [jnp.arange(0, d_head, 2), jnp.arange(1, d_head, 2)])     # even | odd components

    # RoPE tables (half-split order); shared across batch for default positions.
    if token_positions is None:
        pos = jnp.arange(S, dtype=jnp.int32)[None, :]             # (1, S)
    else:
        pos = token_positions                                     # (B, S)
    cos, sin = make_rope_tables_halfsplit(pos, d_head, theta)     # (P, S, Dh)
    shared_rope = cos.shape[0] == 1

    # Head-major bf16 weight layouts (trace-time, one-off): wq/wk/wv (H, D, Dh)
    # in half-split column order with 1/sqrt(Dh) folded into wq; wo (H, Dh, D).
    scale = 1.0 / math.sqrt(d_head)

    def heads_in(w):
        return w.reshape(D, num_heads, d_head).transpose(1, 0, 2)

    wq = (heads_in(params["wq"])[:, :, half_perm] * scale).astype(jnp.bfloat16)
    wk = heads_in(params["wk"])[:, :, half_perm].astype(jnp.bfloat16)
    wv = heads_in(params["wv"]).astype(jnp.bfloat16)
    wo = params["wo"].reshape(num_heads, d_head, D).astype(jnp.bfloat16)
    w1 = params["w1"].astype(jnp.bfloat16)
    w3 = params["w3"].astype(jnp.bfloat16)
    w2 = params["w2"].astype(jnp.bfloat16)

    Bb = _choose_batch_block(B, S, D)
    nb = B // Bb
    Ft = _choose_ffn_tile(F)
    nf = F // Ft

    # Grid-invariant operands: constant index map (never re-DMA'd across steps)
    # and, when supported, single-buffered (double buffering buys them nothing).
    inv_kwargs = {"pipeline_mode": pl.Buffered(1)} if single_buffer_invariants else {}

    def invariant(shape):
        return pl.BlockSpec(shape, lambda i, f: (0,) * len(shape), **inv_kwargs)

    x_spec = pl.BlockSpec((Bb, S, D), lambda i, f: (i, 0, 0))
    out_spec = pl.BlockSpec((Bb, S, D), lambda i, f: (i, 0, 0))
    if shared_rope:
        rope_spec = pl.BlockSpec((1, S, d_head), lambda i, f: (0, 0, 0), **inv_kwargs)
    else:
        rope_spec = pl.BlockSpec((Bb, S, d_head), lambda i, f: (i, 0, 0))
    w1_spec = pl.BlockSpec((D, Ft), lambda i, f: (0, f))   # streamed, double-buffered
    w3_spec = pl.BlockSpec((D, Ft), lambda i, f: (0, f))
    w2_spec = pl.BlockSpec((Ft, D), lambda i, f: (f, 0))

    kernel = functools.partial(
        _transformer_block_kernel,
        num_heads=num_heads, d_head=d_head, batch_block=Bb, eps=1e-5,
        shared_rope=shared_rope)

    scratch = [
        pltpu.VMEM((Bb * S, d_head), jnp.float32),    # qh
        pltpu.VMEM((Bb * S, d_head), jnp.float32),    # kh
        pltpu.VMEM((Bb * S, d_head), jnp.float32),    # vh
        pltpu.VMEM((Bb * S, d_head), jnp.bfloat16),   # head output slab (bf16)
        pltpu.VMEM((Bb * S, D), jnp.float32),         # attention accumulator
        pltpu.VMEM((Bb * S, D), jnp.float32),         # y1 (residual 1)
        pltpu.VMEM((Bb * S, D), jnp.bfloat16),        # h2 (FFN input)
        pltpu.VMEM((Bb * S, D), jnp.float32),         # FFN accumulator
    ]

    return pl.pallas_call(
        kernel,
        out_shape=jax.ShapeDtypeStruct((B, S, D), jnp.float32),
        grid=(nb, nf),
        in_specs=[
            x_spec,
            invariant((1, D)),                   # g1
            invariant((num_heads, D, d_head)),   # wq
            invariant((num_heads, D, d_head)),   # wk
            invariant((num_heads, D, d_head)),   # wv
            invariant((num_heads, d_head, D)),   # wo
            invariant((1, D)),                   # g2
            w1_spec, w3_spec, w2_spec,           # FFN chunks
            rope_spec, rope_spec,                # cos, sin
        ],
        out_specs=out_spec,
        scratch_shapes=scratch,
        compiler_params=pltpu.CompilerParams(
            dimension_semantics=("parallel", "arbitrary"),
            vmem_limit_bytes=_vmem_limit_bytes(),
        ),
    )(x, params["g1"], wq, wk, wv, wo, params["g2"], w1, w3, w2, cos, sin)


def transformer_block(x, params, num_heads, theta=10000.0, token_positions=None):
    try:
        out = _transformer_block_pallas(x, params, num_heads, theta, token_positions,
                                        single_buffer_invariants=True)
        return jax.block_until_ready(out)
    except Exception:
        # TODO(synk): pipeline_mode=pl.Buffered(1) on invariant operands needs a recent
        # JAX/Mosaic; fall back to default double-buffering if it is rejected.
        return _transformer_block_pallas(x, params, num_heads, theta, token_positions,
                                         single_buffer_invariants=False)


# -----------------------------------------------------------------------------
# Pure-JAX f32 reference (original interleaved-RoPE formulation) for sanity check.
# -----------------------------------------------------------------------------
def _make_rope_tables_interleaved(token_positions, d_head, theta):
    pos = token_positions.astype(jnp.float32)
    k = jnp.arange(d_head // 2, dtype=jnp.float32)
    inv_freq = 1.0 / (theta ** (2.0 * k / d_head))
    ang = pos[..., None] * inv_freq[None, None, :]
    cos = jnp.repeat(jnp.cos(ang), 2, axis=-1)
    sin = jnp.repeat(jnp.sin(ang), 2, axis=-1)
    return cos, sin


def _make_pair_rotation_matrix(d_head):
    R = jnp.zeros((d_head, d_head), jnp.float32)
    idx = jnp.arange(0, d_head, 2)
    R = R.at[idx + 1, idx].set(-1.0)
    R = R.at[idx, idx + 1].set(1.0)
    return R


def reference_block(x, params, num_heads, theta=10000.0):
    B, S, D = x.shape
    d_head = D // num_heads
    eps = 1e-5
    pos = jnp.broadcast_to(jnp.arange(S, dtype=jnp.int32), (B, S))
    cos, sin = _make_rope_tables_interleaved(pos, d_head, theta)
    R = _make_pair_rotation_matrix(d_head)

    def rms(v, g):
        return v * lax.rsqrt(jnp.mean(v * v, -1, keepdims=True) + eps) * g[0]

    h = rms(x, params["g1"])
    q = h @ params["wq"]; k = h @ params["wk"]; v = h @ params["wv"]

    def split(t):  # (B, S, D) -> (B, H, S, Dh)
        return t.reshape(B, S, num_heads, d_head).transpose(0, 2, 1, 3)

    qh, kh, vh = split(q), split(k), split(v)
    cos_b = cos[:, None]; sin_b = sin[:, None]
    qh = qh * cos_b + (qh @ R) * sin_b
    kh = kh * cos_b + (kh @ R) * sin_b
    s = jnp.einsum("bhqd,bhkd->bhqk", qh, kh) / math.sqrt(d_head)
    mask = jnp.arange(S)[:, None] >= jnp.arange(S)[None, :]
    s = jnp.where(mask, s, -jnp.inf)
    p = jax.nn.softmax(s, axis=-1)
    o = jnp.einsum("bhqk,bhkd->bhqd", p, vh).transpose(0, 2, 1, 3).reshape(B, S, D)
    y1 = x + o @ params["wo"]

    h2 = rms(y1, params["g2"])
    a = h2 @ params["w1"]; b = h2 @ params["w3"]
    return y1 + (a * jax.nn.sigmoid(a) * b) @ params["w2"]


if __name__ == "__main__":
    # Small shapes consistent with the module's forward signature.
    B, S, D, H = 2, 8, 32, 4
    # TODO(synk): the reference __init__ calls SwiGLU(d_model) which derives its own
    # inner width; we use d_ff=64 explicitly (~8/3*d_model rounded to a multiple of 64).
    F = 64

    key = jax.random.PRNGKey(0)
    k_x, k_p = jax.random.split(key)
    x = jax.random.normal(k_x, (B, S, D), dtype=jnp.float32)
    params = init_params(k_p, D, F)

    out = transformer_block(x, params, num_heads=H)
    out = jax.block_until_ready(out)

    ref = reference_block(x, params, num_heads=H)
    assert out.shape == (B, S, D)
    # Kernel uses bf16 MXU operands; reference is pure f32, so tolerance reflects
    # bf16 rounding, not a math mismatch.
    assert jnp.allclose(out, ref, atol=1e-1, rtol=1e-1), (
        f"max abs err = {jnp.max(jnp.abs(out - ref))}"
    )
    print("KERNEL_OK")
</pallas_src>

<mosaic_0001>
module attributes {stable_mosaic.version = 11 : i64} {
  func.func @_transformer_block_kernel(%arg0: i32, %arg1: i32, %arg2: memref<2x8x32xf32, #tpu.memory_space<vmem>>, %arg3: memref<1x32xf32, #tpu.memory_space<vmem>>, %arg4: memref<4x32x8xbf16, #tpu.memory_space<vmem>>, %arg5: memref<4x32x8xbf16, #tpu.memory_space<vmem>>, %arg6: memref<4x32x8xbf16, #tpu.memory_space<vmem>>, %arg7: memref<4x8x32xbf16, #tpu.memory_space<vmem>>, %arg8: memref<1x32xf32, #tpu.memory_space<vmem>>, %arg9: memref<32x64xbf16, #tpu.memory_space<vmem>>, %arg10: memref<32x64xbf16, #tpu.memory_space<vmem>>, %arg11: memref<64x32xbf16, #tpu.memory_space<vmem>>, %arg12: memref<1x8x8xf32, #tpu.memory_space<vmem>>, %arg13: memref<1x8x8xf32, #tpu.memory_space<vmem>>, %arg14: memref<2x8x32xf32, #tpu.memory_space<vmem>>, %arg15: memref<16x8xf32, #tpu.memory_space<vmem>>, %arg16: memref<16x8xf32, #tpu.memory_space<vmem>>, %arg17: memref<16x8xf32, #tpu.memory_space<vmem>>, %arg18: memref<16x8xbf16, #tpu.memory_space<vmem>>, %arg19: memref<16x32xf32, #tpu.memory_space<vmem>>, %arg20: memref<16x32xf32, #tpu.memory_space<vmem>>, %arg21: memref<16x32xbf16, #tpu.memory_space<vmem>>, %arg22: memref<16x32xf32, #tpu.memory_space<vmem>>) attributes {dimension_semantics = [#tpu.dimension_semantics<parallel>, #tpu.dimension_semantics<arbitrary>], iteration_bounds = array<i64: 1, 1>, scalar_prefetch = 0 : i64, scratch_operands = 8 : i64, tpu.core_type = #tpu.core_type<tc>, window_params = [{transform_indices = @transform_0, window_bounds = array<i64: 2, 8, 32>}, {pipeline_mode = #tpu.pipeline_mode<synchronous>, transform_indices = @transform_1, window_bounds = array<i64: 1, 32>}, {pipeline_mode = #tpu.pipeline_mode<synchronous>, transform_indices = @transform_2, window_bounds = array<i64: 4, 32, 8>}, {pipeline_mode = #tpu.pipeline_mode<synchronous>, transform_indices = @transform_3, window_bounds = array<i64: 4, 32, 8>}, {pipeline_mode = #tpu.pipeline_mode<synchronous>, transform_indices = @transform_4, window_bounds = array<i64: 4, 32, 8>}, {pipeline_mode = #tpu.pipeline_mode<synchronous>, transform_indices = @transform_5, window_bounds = array<i64: 4, 8, 32>}, {pipeline_mode = #tpu.pipeline_mode<synchronous>, transform_indices = @transform_6, window_bounds = array<i64: 1, 32>}, {transform_indices = @transform_7, window_bounds = array<i64: 32, 64>}, {transform_indices = @transform_8, window_bounds = array<i64: 32, 64>}, {transform_indices = @transform_9, window_bounds = array<i64: 64, 32>}, {pipeline_mode = #tpu.pipeline_mode<synchronous>, transform_indices = @transform_10, window_bounds = array<i64: 1, 8, 8>}, {pipeline_mode = #tpu.pipeline_mode<synchronous>, transform_indices = @transform_11, window_bounds = array<i64: 1, 8, 8>}, {transform_indices = @transform_12, window_bounds = array<i64: 2, 8, 32>}]} {
    %c0_i32 = arith.constant 0 : i32
    %0 = arith.cmpi eq, %arg1, %c0_i32 : i32
    %1 = arith.extui %0 : i1 to i32
    %c0_i32_0 = arith.constant 0 : i32
    %2 = arith.cmpi ne, %1, %c0_i32_0 : i32
    scf.if %2 {
      %c0_19 = arith.constant 0 : index
      %c0_20 = arith.constant 0 : index
      %c0_21 = arith.constant 0 : index
      %26 = vector.load %arg2[%c0_19, %c0_20, %c0_21] : memref<2x8x32xf32, #tpu.memory_space<vmem>>, vector<2x8x32xf32>
      %27 = vector.shape_cast %26 : vector<2x8x32xf32> to vector<16x32xf32>
      %28 = arith.mulf %27, %27 : vector<16x32xf32>
      %cst_22 = arith.constant dense<0.000000e+00> : vector<16xf32>
      %29 = vector.multi_reduction <add>, %28, %cst_22 [1] : vector<16x32xf32> to vector<16xf32>
      %30 = vector.shape_cast %29 : vector<16xf32> to vector<16x1xf32>
      %cst_23 = arith.constant 3.200000e+01 : f32
      %31 = vector.broadcast %cst_23 : f32 to vector<16x1xf32>
      %32 = arith.divf %30, %31 : vector<16x1xf32>
      %cst_24 = arith.constant 9.99999974E-6 : f32
      %33 = vector.broadcast %cst_24 : f32 to vector<16x1xf32>
      %34 = arith.addf %32, %33 : vector<16x1xf32>
      %35 = math.rsqrt %34 : vector<16x1xf32>
      %36 = vector.broadcast %35 : vector<16x1xf32> to vector<16x32xf32>
      %37 = arith.mulf %27, %36 : vector<16x32xf32>
      %c0_25 = arith.constant 0 : index
      %c0_26 = arith.constant 0 : index
      %38 = vector.load %arg3[%c0_25, %c0_26] : memref<1x32xf32, #tpu.memory_space<vmem>>, vector<1x32xf32>
      %39 = vector.shape_cast %38 : vector<1x32xf32> to vector<32xf32>
      %40 = vector.shape_cast %39 : vector<32xf32> to vector<1x32xf32>
      %41 = vector.broadcast %40 : vector<1x32xf32> to vector<16x32xf32>
      %42 = arith.mulf %37, %41 : vector<16x32xf32>
      %43 = arith.truncf %42 : vector<16x32xf32> to vector<16x32xbf16>
      %44 = tpu.iota {dimensions = array<i32: 0>} : vector<8x8xi32>
      %45 = tpu.iota {dimensions = array<i32: 1>} : vector<8x8xi32>
      %46 = arith.cmpi sge, %44, %45 : vector<8x8xi32>
      %c0_27 = arith.constant 0 : index
      %c0_28 = arith.constant 0 : index
      %c0_29 = arith.constant 0 : index
      %47 = vector.load %arg12[%c0_27, %c0_28, %c0_29] : memref<1x8x8xf32, #tpu.memory_space<vmem>>, vector<1x8x8xf32>
      %48 = vector.shape_cast %47 : vector<1x8x8xf32> to vector<8x8xf32>
      %c0_30 = arith.constant 0 : index
      %c0_31 = arith.constant 0 : index
      %c0_32 = arith.constant 0 : index
      %49 = vector.load %arg13[%c0_30, %c0_31, %c0_32] : memref<1x8x8xf32, #tpu.memory_space<vmem>>, vector<1x8x8xf32>
      %50 = vector.shape_cast %49 : vector<1x8x8xf32> to vector<8x8xf32>
      %cst_33 = arith.constant 0.000000e+00 : f32
      %51 = vector.broadcast %cst_33 : f32 to vector<16x32xf32>
      %c0_34 = arith.constant 0 : index
      %c0_35 = arith.constant 0 : index
      %52 = vector.load %arg19[%c0_34, %c0_35] : memref<16x32xf32, #tpu.memory_space<vmem>>, vector<16x32xf32>
      tpu.vector_store %arg19[%c0_34, %c0_35], %51 {strides = array<i32>} : memref<16x32xf32, #tpu.memory_space<vmem>>, vector<16x32xf32>,
      %cst_36 = arith.constant -1.000000e+30 : f32
      %c0_i32_37 = arith.constant 0 : i32
      %c4_i32 = arith.constant 4 : i32
      %53 = arith.addi %c0_i32_37, %c4_i32 : i32
      %c1_i32 = arith.constant 1 : i32
      scf.for %arg23 = %c0_i32_37 to %53 step %c1_i32  : i32 {
        %76 = arith.index_cast %arg23 : i32 to index
        %c0_53 = arith.constant 0 : index
        %c0_54 = arith.constant 0 : index
        %77 = vector.load %arg4[%76, %c0_53, %c0_54] : memref<4x32x8xbf16, #tpu.memory_space<vmem>>, vector<1x32x8xbf16>
        %78 = vector.shape_cast %77 : vector<1x32x8xbf16> to vector<32x8xbf16>
        %cst_55 = arith.constant dense<0.000000e+00> : vector<16x8xf32>
        %79 = tpu.matmul %43, %78, %cst_55 {dimension_numbers = #tpu.dot_dimension_numbers<[1], [0], [0], [1], [0, 0, 1, 1], [], []>} : vector<16x32xbf16>, vector<32x8xbf16>, vector<16x8xf32> -> vector<16x8xf32>
        %c0_56 = arith.constant 0 : index
        %c0_57 = arith.constant 0 : index
        %80 = vector.load %arg15[%c0_56, %c0_57] : memref<16x8xf32, #tpu.memory_space<vmem>>, vector<16x8xf32>
        tpu.vector_store %arg15[%c0_56, %c0_57], %79 {strides = array<i32>} : memref<16x8xf32, #tpu.memory_space<vmem>>, vector<16x8xf32>,
        %81 = arith.index_cast %arg23 : i32 to index
        %c0_58 = arith.constant 0 : index
        %c0_59 = arith.constant 0 : index
        %82 = vector.load %arg5[%81, %c0_58, %c0_59] : memref<4x32x8xbf16, #tpu.memory_space<vmem>>, vector<1x32x8xbf16>
        %83 = vector.shape_cast %82 : vector<1x32x8xbf16> to vector<32x8xbf16>
        %cst_60 = arith.constant dense<0.000000e+00> : vector<16x8xf32>
        %84 = tpu.matmul %43, %83, %cst_60 {dimension_numbers = #tpu.dot_dimension_numbers<[1], [0], [0], [1], [0, 0, 1, 1], [], []>} : vector<16x32xbf16>, vector<32x8xbf16>, vector<16x8xf32> -> vector<16x8xf32>
        %c0_61 = arith.constant 0 : index
        %c0_62 = arith.constant 0 : index
        %85 = vector.load %arg16[%c0_61, %c0_62] : memref<16x8xf32, #tpu.memory_space<vmem>>, vector<16x8xf32>
        tpu.vector_store %arg16[%c0_61, %c0_62], %84 {strides = array<i32>} : memref<16x8xf32, #tpu.memory_space<vmem>>, vector<16x8xf32>,
        %86 = arith.index_cast %arg23 : i32 to index
        %c0_63 = arith.constant 0 : index
        %c0_64 = arith.constant 0 : index
        %87 = vector.load %arg6[%86, %c0_63, %c0_64] : memref<4x32x8xbf16, #tpu.memory_space<vmem>>, vector<1x32x8xbf16>
        %88 = vector.shape_cast %87 : vector<1x32x8xbf16> to vector<32x8xbf16>
        %cst_65 = arith.constant dense<0.000000e+00> : vector<16x8xf32>
        %89 = tpu.matmul %43, %88, %cst_65 {dimension_numbers = #tpu.dot_dimension_numbers<[1], [0], [0], [1], [0, 0, 1, 1], [], []>} : vector<16x32xbf16>, vector<32x8xbf16>, vector<16x8xf32> -> vector<16x8xf32>
        %c0_66 = arith.constant 0 : index
        %c0_67 = arith.constant 0 : index
        %90 = vector.load %arg17[%c0_66, %c0_67] : memref<16x8xf32, #tpu.memory_space<vmem>>, vector<16x8xf32>
        tpu.vector_store %arg17[%c0_66, %c0_67], %89 {strides = array<i32>} : memref<16x8xf32, #tpu.memory_space<vmem>>, vector<16x8xf32>,
        %c0_i32_68 = arith.constant 0 : i32
        %c2_i32 = arith.constant 2 : i32
        %91 = arith.addi %c0_i32_68, %c2_i32 : i32
        %c1_i32_69 = arith.constant 1 : i32
        scf.for %arg24 = %c0_i32_68 to %91 step %c1_i32_69  : i32 {
          %c8_i32 = arith.constant 8 : i32
          %100 = arith.muli %arg24, %c8_i32 : i32
          %101 = tpu.assume_multiple %100, 8 : i32
          %102 = arith.index_cast %101 : i32 to index
          %c0_80 = arith.constant 0 : index
          %103 = vector.load %arg15[%102, %c0_80] : memref<16x8xf32, #tpu.memory_space<vmem>>, vector<8x8xf32>
          %104 = arith.index_cast %101 : i32 to index
          %c0_81 = arith.constant 0 : index
          %105 = vector.load %arg16[%104, %c0_81] : memref<16x8xf32, #tpu.memory_space<vmem>>, vector<8x8xf32>
          %106 = arith.index_cast %101 : i32 to index
          %c0_82 = arith.constant 0 : index
          %107 = vector.load %arg17[%106, %c0_82] : memref<16x8xf32, #tpu.memory_space<vmem>>, vector<8x8xf32>
          %108 = vector.extract_strided_slice %103 {offsets = [0, 4], sizes = [8, 4], strides = [1, 1]} : vector<8x8xf32> to vector<8x4xf32>
          %cst_83 = arith.constant 0.000000e+00 : f32
          %109 = vector.broadcast %cst_83 : f32 to vector<8x4xf32>
          %110 = arith.subf %109, %108 : vector<8x4xf32>
          %111 = vector.extract_strided_slice %103 {offsets = [0, 0], sizes = [8, 4], strides = [1, 1]} : vector<8x8xf32> to vector<8x4xf32>
          %112 = tpu.concatenate %110, %111 in 1 : vector<8x4xf32>, vector<8x4xf32> -> vector<8x8xf32>
          %113 = vector.extract_strided_slice %105 {offsets = [0, 4], sizes = [8, 4], strides = [1, 1]} : vector<8x8xf32> to vector<8x4xf32>
          %cst_84 = arith.constant 0.000000e+00 : f32
          %114 = vector.broadcast %cst_84 : f32 to vector<8x4xf32>
          %115 = arith.subf %114, %113 : vector<8x4xf32>
          %116 = vector.extract_strided_slice %105 {offsets = [0, 0], sizes = [8, 4], strides = [1, 1]} : vector<8x8xf32> to vector<8x4xf32>
          %117 = tpu.concatenate %115, %116 in 1 : vector<8x4xf32>, vector<8x4xf32> -> vector<8x8xf32>
          %118 = arith.mulf %103, %48 : vector<8x8xf32>
          %119 = arith.mulf %112, %50 : vector<8x8xf32>
          %120 = arith.addf %118, %119 : vector<8x8xf32>
          %121 = arith.mulf %105, %48 : vector<8x8xf32>
          %122 = arith.mulf %117, %50 : vector<8x8xf32>
          %123 = arith.addf %121, %122 : vector<8x8xf32>
          %124 = arith.truncf %120 : vector<8x8xf32> to vector<8x8xbf16>
          %125 = arith.truncf %123 : vector<8x8xf32> to vector<8x8xbf16>
          %cst_85 = arith.constant dense<0.000000e+00> : vector<8x8xf32>
          %126 = tpu.matmul %124, %125, %cst_85 {dimension_numbers = #tpu.dot_dimension_numbers<[1], [1], [0], [0], [0, 0, 1, 0], [], []>} : vector<8x8xbf16>, vector<8x8xbf16>, vector<8x8xf32> -> vector<8x8xf32>
          %127 = vector.broadcast %cst_36 : f32 to vector<8x8xf32>
          %128 = arith.select %46, %126, %127 : vector<8x8xi1>, vector<8x8xf32>
          %cst_86 = arith.constant dense<0xFF800000> : vector<8xf32>
          %129 = vector.multi_reduction <maximumf>, %128, %cst_86 [1] : vector<8x8xf32> to vector<8xf32>
          %130 = vector.shape_cast %129 : vector<8xf32> to vector<8x1xf32>
          %131 = vector.broadcast %130 : vector<8x1xf32> to vector<8x8xf32>
          %132 = arith.subf %128, %131 : vector<8x8xf32>
          %133 = math.exp %132 : vector<8x8xf32>
          %cst_87 = arith.constant dense<0.000000e+00> : vector<8xf32>
          %134 = vector.multi_reduction <add>, %133, %cst_87 [1] : vector<8x8xf32> to vector<8xf32>
          %135 = vector.shape_cast %134 : vector<8xf32> to vector<8x1xf32>
          %136 = arith.truncf %133 : vector<8x8xf32> to vector<8x8xbf16>
          %137 = arith.truncf %107 : vector<8x8xf32> to vector<8x8xbf16>
          %cst_88 = arith.constant dense<0.000000e+00> : vector<8x8xf32>
          %138 = tpu.matmul %136, %137, %cst_88 {dimension_numbers = #tpu.dot_dimension_numbers<[1], [0], [0], [1], [0, 0, 1, 1], [], []>} : vector<8x8xbf16>, vector<8x8xbf16>, vector<8x8xf32> -> vector<8x8xf32>
          %cst_89 = arith.constant 1.000000e+00 : f32
          %139 = vector.broadcast %cst_89 : f32 to vector<8x1xf32>
          %140 = arith.divf %139, %135 : vector<8x1xf32>
          %141 = vector.broadcast %140 : vector<8x1xf32> to vector<8x8xf32>
          %142 = arith.mulf %138, %141 : vector<8x8xf32>
          %143 = arith.truncf %142 : vector<8x8xf32> to vector<8x8xbf16>
          %144 = arith.index_cast %101 : i32 to index
          %c0_90 = arith.constant 0 : index
          %145 = vector.load %arg18[%144, %c0_90] : memref<16x8xbf16, #tpu.memory_space<vmem>>, vector<8x8xbf16>
          tpu.vector_store %arg18[%144, %c0_90], %143 {strides = array<i32>} : memref<16x8xbf16, #tpu.memory_space<vmem>>, vector<8x8xbf16>,
        }
        %c2_i32_70 = arith.constant 2 : i32
        %c0_71 = arith.constant 0 : index
        %c0_72 = arith.constant 0 : index
        %92 = vector.load %arg19[%c0_71, %c0_72] : memref<16x32xf32, #tpu.memory_space<vmem>>, vector<16x32xf32>
        %c0_73 = arith.constant 0 : index
        %c0_74 = arith.constant 0 : index
        %93 = vector.load %arg18[%c0_73, %c0_74] : memref<16x8xbf16, #tpu.memory_space<vmem>>, vector<16x8xbf16>
        %94 = arith.index_cast %arg23 : i32 to index
        %c0_75 = arith.constant 0 : index
        %c0_76 = arith.constant 0 : index
        %95 = vector.load %arg7[%94, %c0_75, %c0_76] : memref<4x8x32xbf16, #tpu.memory_space<vmem>>, vector<1x8x32xbf16>
        %96 = vector.shape_cast %95 : vector<1x8x32xbf16> to vector<8x32xbf16>
        %cst_77 = arith.constant dense<0.000000e+00> : vector<16x32xf32>
        %97 = tpu.matmul %93, %96, %cst_77 {dimension_numbers = #tpu.dot_dimension_numbers<[1], [0], [0], [1], [0, 0, 1, 1], [], []>} : vector<16x8xbf16>, vector<8x32xbf16>, vector<16x32xf32> -> vector<16x32xf32>
        %98 = arith.addf %92, %97 : vector<16x32xf32>
        %c0_78 = arith.constant 0 : index
        %c0_79 = arith.constant 0 : index
        %99 = vector.load %arg19[%c0_78, %c0_79] : memref<16x32xf32, #tpu.memory_space<vmem>>, vector<16x32xf32>
        tpu.vector_store %arg19[%c0_78, %c0_79], %98 {strides = array<i32>} : memref<16x32xf32, #tpu.memory_space<vmem>>, vector<16x32xf32>,
      }
      %c4_i32_38 = arith.constant 4 : i32
      %c0_39 = arith.constant 0 : index
      %c0_40 = arith.constant 0 : index
      %54 = vector.load %arg19[%c0_39, %c0_40] : memref<16x32xf32, #tpu.memory_space<vmem>>, vector<16x32xf32>
      %55 = arith.addf %27, %54 : vector<16x32xf32>
      %c0_41 = arith.constant 0 : index
      %c0_42 = arith.constant 0 : index
      %56 = vector.load %arg20[%c0_41, %c0_42] : memref<16x32xf32, #tpu.memory_space<vmem>>, vector<16x32xf32>
      tpu.vector_store %arg20[%c0_41, %c0_42], %55 {strides = array<i32>} : memref<16x32xf32, #tpu.memory_space<vmem>>, vector<16x32xf32>,
      %57 = arith.mulf %55, %55 : vector<16x32xf32>
      %cst_43 = arith.constant dense<0.000000e+00> : vector<16xf32>
      %58 = vector.multi_reduction <add>, %57, %cst_43 [1] : vector<16x32xf32> to vector<16xf32>
      %59 = vector.shape_cast %58 : vector<16xf32> to vector<16x1xf32>
      %cst_44 = arith.constant 3.200000e+01 : f32
      %60 = vector.broadcast %cst_44 : f32 to vector<16x1xf32>
      %61 = arith.divf %59, %60 : vector<16x1xf32>
      %cst_45 = arith.constant 9.99999974E-6 : f32
      %62 = vector.broadcast %cst_45 : f32 to vector<16x1xf32>
      %63 = arith.addf %61, %62 : vector<16x1xf32>
      %64 = math.rsqrt %63 : vector<16x1xf32>
      %65 = vector.broadcast %64 : vector<16x1xf32> to vector<16x32xf32>
      %66 = arith.mulf %55, %65 : vector<16x32xf32>
      %c0_46 = arith.constant 0 : index
      %c0_47 = arith.constant 0 : index
      %67 = vector.load %arg8[%c0_46, %c0_47] : memref<1x32xf32, #tpu.memory_space<vmem>>, vector<1x32xf32>
      %68 = vector.shape_cast %67 : vector<1x32xf32> to vector<32xf32>
      %69 = vector.shape_cast %68 : vector<32xf32> to vector<1x32xf32>
      %70 = vector.broadcast %69 : vector<1x32xf32> to vector<16x32xf32>
      %71 = arith.mulf %66, %70 : vector<16x32xf32>
      %72 = arith.truncf %71 : vector<16x32xf32> to vector<16x32xbf16>
      %c0_48 = arith.constant 0 : index
      %c0_49 = arith.constant 0 : index
      %73 = vector.load %arg21[%c0_48, %c0_49] : memref<16x32xbf16, #tpu.memory_space<vmem>>, vector<16x32xbf16>
      tpu.vector_store %arg21[%c0_48, %c0_49], %72 {strides = array<i32>} : memref<16x32xbf16, #tpu.memory_space<vmem>>, vector<16x32xbf16>,
      %cst_50 = arith.constant 0.000000e+00 : f32
      %74 = vector.broadcast %cst_50 : f32 to vector<16x32xf32>
      %c0_51 = arith.constant 0 : index
      %c0_52 = arith.constant 0 : index
      %75 = vector.load %arg22[%c0_51, %c0_52] : memref<16x32xf32, #tpu.memory_space<vmem>>, vector<16x32xf32>
      tpu.vector_store %arg22[%c0_51, %c0_52], %74 {strides = array<i32>} : memref<16x32xf32, #tpu.memory_space<vmem>>, vector<16x32xf32>,
    } else {
    }
    %c0 = arith.constant 0 : index
    %c0_1 = arith.constant 0 : index
    %3 = vector.load %arg21[%c0, %c0_1] : memref<16x32xbf16, #tpu.memory_space<vmem>>, vector<16x32xbf16>
    %c0_2 = arith.constant 0 : index
    %c0_3 = arith.constant 0 : index
    %4 = vector.load %arg9[%c0_2, %c0_3] : memref<32x64xbf16, #tpu.memory_space<vmem>>, vector<32x64xbf16>
    %cst = arith.constant dense<0.000000e+00> : vector<16x64xf32>
    %5 = tpu.matmul %3, %4, %cst {dimension_numbers = #tpu.dot_dimension_numbers<[1], [0], [0], [1], [0, 0, 1, 1], [], []>} : vector<16x32xbf16>, vector<32x64xbf16>, vector<16x64xf32> -> vector<16x64xf32>
    %c0_4 = arith.constant 0 : index
    %c0_5 = arith.constant 0 : index
    %6 = vector.load %arg10[%c0_4, %c0_5] : memref<32x64xbf16, #tpu.memory_space<vmem>>, vector<32x64xbf16>
    %cst_6 = arith.constant dense<0.000000e+00> : vector<16x64xf32>
    %7 = tpu.matmul %3, %6, %cst_6 {dimension_numbers = #tpu.dot_dimension_numbers<[1], [0], [0], [1], [0, 0, 1, 1], [], []>} : vector<16x32xbf16>, vector<32x64xbf16>, vector<16x64xf32> -> vector<16x64xf32>
    %cst_7 = arith.constant 5.000000e-01 : f32
    %8 = vector.broadcast %cst_7 : f32 to vector<16x64xf32>
    %9 = arith.mulf %8, %5 : vector<16x64xf32>
    %10 = math.tanh %9 : vector<16x64xf32>
    %cst_8 = arith.constant 1.000000e+00 : f32
    %11 = vector.broadcast %cst_8 : f32 to vector<16x64xf32>
    %12 = arith.addf %10, %11 : vector<16x64xf32>
    %cst_9 = arith.constant 5.000000e-01 : f32
    %13 = vector.broadcast %cst_9 : f32 to vector<16x64xf32>
    %14 = arith.mulf %13, %12 : vector<16x64xf32>
    %15 = arith.mulf %5, %14 : vector<16x64xf32>
    %c0_10 = arith.constant 0 : index
    %c0_11 = arith.constant 0 : index
    %16 = vector.load %arg22[%c0_10, %c0_11] : memref<16x32xf32, #tpu.memory_space<vmem>>, vector<16x32xf32>
    %17 = arith.mulf %15, %7 : vector<16x64xf32>
    %18 = arith.truncf %17 : vector<16x64xf32> to vector<16x64xbf16>
    %c0_12 = arith.constant 0 : index
    %c0_13 = arith.constant 0 : index
    %19 = vector.load %arg11[%c0_12, %c0_13] : memref<64x32xbf16, #tpu.memory_space<vmem>>, vector<64x32xbf16>
    %cst_14 = arith.constant dense<0.000000e+00> : vector<16x32xf32>
    %20 = tpu.matmul %18, %19, %cst_14 {dimension_numbers = #tpu.dot_dimension_numbers<[1], [0], [0], [1], [0, 0, 1, 1], [], []>} : vector<16x64xbf16>, vector<64x32xbf16>, vector<16x32xf32> -> vector<16x32xf32>
    %21 = arith.addf %16, %20 : vector<16x32xf32>
    %c0_15 = arith.constant 0 : index
    %c0_16 = arith.constant 0 : index
    %22 = vector.load %arg22[%c0_15, %c0_16] : memref<16x32xf32, #tpu.memory_space<vmem>>, vector<16x32xf32>
    tpu.vector_store %arg22[%c0_15, %c0_16], %21 {strides = array<i32>} : memref<16x32xf32, #tpu.memory_space<vmem>>, vector<16x32xf32>,
    %c0_i32_17 = arith.constant 0 : i32
    %23 = arith.cmpi eq, %arg1, %c0_i32_17 : i32
    %24 = arith.extui %23 : i1 to i32
    %c0_i32_18 = arith.constant 0 : i32
    %25 = arith.cmpi ne, %24, %c0_i32_18 : i32
    scf.if %25 {
      %c0_19 = arith.constant 0 : index
      %c0_20 = arith.constant 0 : index
      %26 = vector.load %arg20[%c0_19, %c0_20] : memref<16x32xf32, #tpu.memory_space<vmem>>, vector<16x32xf32>
      %c0_21 = arith.constant 0 : index
      %c0_22 = arith.constant 0 : index
      %27 = vector.load %arg22[%c0_21, %c0_22] : memref<16x32xf32, #tpu.memory_space<vmem>>, vector<16x32xf32>
      %28 = arith.addf %26, %27 : vector<16x32xf32>
      %29 = vector.shape_cast %28 : vector<16x32xf32> to vector<2x8x32xf32>
      %c0_23 = arith.constant 0 : index
      %c0_24 = arith.constant 0 : index
      %c0_25 = arith.constant 0 : index
      %30 = vector.load %arg14[%c0_23, %c0_24, %c0_25] : memref<2x8x32xf32, #tpu.memory_space<vmem>>, vector<2x8x32xf32>
      tpu.vector_store %arg14[%c0_23, %c0_24, %c0_25], %29 {strides = array<i32>} : memref<2x8x32xf32, #tpu.memory_space<vmem>>, vector<2x8x32xf32>,
    } else {
    }
    return
  }
  func.func @transform_0(%arg0: i32, %arg1: i32) -> (i32, i32, i32) {
    %c0_i32 = arith.constant 0 : i32
    %c0_i32_0 = arith.constant 0 : i32
    %c0_i32_1 = arith.constant 0 : i32
    return %arg0, %c0_i32, %c0_i32_0 : i32, i32, i32
  }
  func.func @transform_1(%arg0: i32, %arg1: i32) -> (i32, i32) {
    %c0_i32 = arith.constant 0 : i32
    %c0_i32_0 = arith.constant 0 : i32
    %c0_i32_1 = arith.constant 0 : i32
    return %c0_i32, %c0_i32_0 : i32, i32
  }
  func.func @transform_2(%arg0: i32, %arg1: i32) -> (i32, i32, i32) {
    %c0_i32 = arith.constant 0 : i32
    %c0_i32_0 = arith.constant 0 : i32
    %c0_i32_1 = arith.constant 0 : i32
    %c0_i32_2 = arith.constant 0 : i32
    return %c0_i32, %c0_i32_0, %c0_i32_1 : i32, i32, i32
  }
  func.func @transform_3(%arg0: i32, %arg1: i32) -> (i32, i32, i32) {
    %c0_i32 = arith.constant 0 : i32
    %c0_i32_0 = arith.constant 0 : i32
    %c0_i32_1 = arith.constant 0 : i32
    %c0_i32_2 = arith.constant 0 : i32
    return %c0_i32, %c0_i32_0, %c0_i32_1 : i32, i32, i32
  }
  func.func @transform_4(%arg0: i32, %arg1: i32) -> (i32, i32, i32) {
    %c0_i32 = arith.constant 0 : i32
    %c0_i32_0 = arith.constant 0 : i32
    %c0_i32_1 = arith.constant 0 : i32
    %c0_i32_2 = arith.constant 0 : i32
    return %c0_i32, %c0_i32_0, %c0_i32_1 : i32, i32, i32
  }
  func.func @transform_5(%arg0: i32, %arg1: i32) -> (i32, i32, i32) {
    %c0_i32 = arith.constant 0 : i32
    %c0_i32_0 = arith.constant 0 : i32
    %c0_i32_1 = arith.constant 0 : i32
    %c0_i32_2 = arith.constant 0 : i32
    return %c0_i32, %c0_i32_0, %c0_i32_1 : i32, i32, i32
  }
  func.func @transform_6(%arg0: i32, %arg1: i32) -> (i32, i32) {
    %c0_i32 = arith.constant 0 : i32
    %c0_i32_0 = arith.constant 0 : i32
    %c0_i32_1 = arith.constant 0 : i32
    return %c0_i32, %c0_i32_0 : i32, i32
  }
  func.func @transform_7(%arg0: i32, %arg1: i32) -> (i32, i32) {
    %c0_i32 = arith.constant 0 : i32
    %c0_i32_0 = arith.constant 0 : i32
    return %c0_i32, %arg1 : i32, i32
  }
  func.func @transform_8(%arg0: i32, %arg1: i32) -> (i32, i32) {
    %c0_i32 = arith.constant 0 : i32
    %c0_i32_0 = arith.constant 0 : i32
    return %c0_i32, %arg1 : i32, i32
  }
  func.func @transform_9(%arg0: i32, %arg1: i32) -> (i32, i32) {
    %c0_i32 = arith.constant 0 : i32
    %c0_i32_0 = arith.constant 0 : i32
    return %arg1, %c0_i32 : i32, i32
  }
  func.func @transform_10(%arg0: i32, %arg1: i32) -> (i32, i32, i32) {
    %c0_i32 = arith.constant 0 : i32
    %c0_i32_0 = arith.constant 0 : i32
    %c0_i32_1 = arith.constant 0 : i32
    %c0_i32_2 = arith.constant 0 : i32
    return %c0_i32, %c0_i32_0, %c0_i32_1 : i32, i32, i32
  }
  func.func @transform_11(%arg0: i32, %arg1: i32) -> (i32, i32, i32) {
    %c0_i32 = arith.constant 0 : i32
    %c0_i32_0 = arith.constant 0 : i32
    %c0_i32_1 = arith.constant 0 : i32
    %c0_i32_2 = arith.constant 0 : i32
    return %c0_i32, %c0_i32_0, %c0_i32_1 : i32, i32, i32
  }
  func.func @transform_12(%arg0: i32, %arg1: i32) -> (i32, i32, i32) {
    %c0_i32 = arith.constant 0 : i32
    %c0_i32_0 = arith.constant 0 : i32
    %c0_i32_1 = arith.constant 0 : i32
    return %arg0, %c0_i32, %c0_i32_0 : i32, i32, i32
  }
}

module attributes {stable_mosaic.version = 11 : i64} {
  func.func @_transformer_block_kernel(%arg0: i32, %arg1: i32, %arg2: memref<2x8x32xf32, #tpu.memory_space<vmem>>, %arg3: memref<1x32xf32, #tpu.memory_space<vmem>>, %arg4: memref<4x32x8xbf16, #tpu.memory_space<vmem>>, %arg5: memref<4x32x8xbf16, #tpu.memory_space<vmem>>, %arg6: memref<4x32x8xbf16, #tpu.memory_space<vmem>>, %arg7: memref<4x8x32xbf16, #tpu.memory_space<vmem>>, %arg8: memref<1x32xf32, #tpu.memory_space<vmem>>, %arg9: memref<32x64xbf16, #tpu.memory_space<vmem>>, %arg10: memref<32x64xbf16, #tpu.memory_space<vmem>>, %arg11: memref<64x32xbf16, #tpu.memory_space<vmem>>, %arg12: memref<1x8x8xf32, #tpu.memory_space<vmem>>, %arg13: memref<1x8x8xf32, #tpu.memory_space<vmem>>, %arg14: memref<2x8x32xf32, #tpu.memory_space<vmem>>, %arg15: memref<16x8xf32, #tpu.memory_space<vmem>>, %arg16: memref<16x8xf32, #tpu.memory_space<vmem>>, %arg17: memref<16x8xf32, #tpu.memory_space<vmem>>, %arg18: memref<16x8xbf16, #tpu.memory_space<vmem>>, %arg19: memref<16x32xf32, #tpu.memory_space<vmem>>, %arg20: memref<16x32xf32, #tpu.memory_space<vmem>>, %arg21: memref<16x32xbf16, #tpu.memory_space<vmem>>, %arg22: memref<16x32xf32, #tpu.memory_space<vmem>>) attributes {dimension_semantics = [#tpu.dimension_semantics<parallel>, #tpu.dimension_semantics<arbitrary>], iteration_bounds = array<i64: 1, 1>, scalar_prefetch = 0 : i64, scratch_operands = 8 : i64, tpu.core_type = #tpu.core_type<tc>, window_params = [{transform_indices = @transform_0, window_bounds = array<i64: 2, 8, 32>}, {pipeline_mode = #tpu.pipeline_mode<synchronous>, transform_indices = @transform_1, window_bounds = array<i64: 1, 32>}, {pipeline_mode = #tpu.pipeline_mode<synchronous>, transform_indices = @transform_2, window_bounds = array<i64: 4, 32, 8>}, {pipeline_mode = #tpu.pipeline_mode<synchronous>, transform_indices = @transform_3, window_bounds = array<i64: 4, 32, 8>}, {pipeline_mode = #tpu.pipeline_mode<synchronous>, transform_indices = @transform_4, window_bounds = array<i64: 4, 32, 8>}, {pipeline_mode = #tpu.pipeline_mode<synchronous>, transform_indices = @transform_5, window_bounds = array<i64: 4, 8, 32>}, {pipeline_mode = #tpu.pipeline_mode<synchronous>, transform_indices = @transform_6, window_bounds = array<i64: 1, 32>}, {transform_indices = @transform_7, window_bounds = array<i64: 32, 64>}, {transform_indices = @transform_8, window_bounds = array<i64: 32, 64>}, {transform_indices = @transform_9, window_bounds = array<i64: 64, 32>}, {pipeline_mode = #tpu.pipeline_mode<synchronous>, transform_indices = @transform_10, window_bounds = array<i64: 1, 8, 8>}, {pipeline_mode = #tpu.pipeline_mode<synchronous>, transform_indices = @transform_11, window_bounds = array<i64: 1, 8, 8>}, {transform_indices = @transform_12, window_bounds = array<i64: 2, 8, 32>}]} {
    %c0_i32 = arith.constant 0 : i32
    %0 = arith.cmpi eq, %arg1, %c0_i32 : i32
    %1 = arith.extui %0 : i1 to i32
    %c0_i32_0 = arith.constant 0 : i32
    %2 = arith.cmpi ne, %1, %c0_i32_0 : i32
    scf.if %2 {
      %c0_19 = arith.constant 0 : index
      %c0_20 = arith.constant 0 : index
      %c0_21 = arith.constant 0 : index
      %26 = vector.load %arg2[%c0_19, %c0_20, %c0_21] : memref<2x8x32xf32, #tpu.memory_space<vmem>>, vector<2x8x32xf32>
      %27 = vector.shape_cast %26 : vector<2x8x32xf32> to vector<16x32xf32>
      %28 = arith.mulf %27, %27 : vector<16x32xf32>
      %cst_22 = arith.constant dense<0.000000e+00> : vector<16xf32>
      %29 = vector.multi_reduction <add>, %28, %cst_22 [1] : vector<16x32xf32> to vector<16xf32>
      %30 = vector.shape_cast %29 : vector<16xf32> to vector<16x1xf32>
      %cst_23 = arith.constant 3.200000e+01 : f32
      %31 = vector.broadcast %cst_23 : f32 to vector<16x1xf32>
      %32 = arith.divf %30, %31 : vector<16x1xf32>
      %cst_24 = arith.constant 9.99999974E-6 : f32
      %33 = vector.broadcast %cst_24 : f32 to vector<16x1xf32>
      %34 = arith.addf %32, %33 : vector<16x1xf32>
      %35 = math.rsqrt %34 : vector<16x1xf32>
      %36 = vector.broadcast %35 : vector<16x1xf32> to vector<16x32xf32>
      %37 = arith.mulf %27, %36 : vector<16x32xf32>
      %c0_25 = arith.constant 0 : index
      %c0_26 = arith.constant 0 : index
      %38 = vector.load %arg3[%c0_25, %c0_26] : memref<1x32xf32, #tpu.memory_space<vmem>>, vector<1x32xf32>
      %39 = vector.shape_cast %38 : vector<1x32xf32> to vector<32xf32>
      %40 = vector.shape_cast %39 : vector<32xf32> to vector<1x32xf32>
      %41 = vector.broadcast %40 : vector<1x32xf32> to vector<16x32xf32>
      %42 = arith.mulf %37, %41 : vector<16x32xf32>
      %43 = arith.truncf %42 : vector<16x32xf32> to vector<16x32xbf16>
      %44 = tpu.iota {dimensions = array<i32: 0>} : vector<8x8xi32>
      %45 = tpu.iota {dimensions = array<i32: 1>} : vector<8x8xi32>
      %46 = arith.cmpi sge, %44, %45 : vector<8x8xi32>
      %c0_27 = arith.constant 0 : index
      %c0_28 = arith.constant 0 : index
      %c0_29 = arith.constant 0 : index
      %47 = vector.load %arg12[%c0_27, %c0_28, %c0_29] : memref<1x8x8xf32, #tpu.memory_space<vmem>>, vector<1x8x8xf32>
      %48 = vector.shape_cast %47 : vector<1x8x8xf32> to vector<8x8xf32>
      %c0_30 = arith.constant 0 : index
      %c0_31 = arith.constant 0 : index
      %c0_32 = arith.constant 0 : index
      %49 = vector.load %arg13[%c0_30, %c0_31, %c0_32] : memref<1x8x8xf32, #tpu.memory_space<vmem>>, vector<1x8x8xf32>
      %50 = vector.shape_cast %49 : vector<1x8x8xf32> to vector<8x8xf32>
      %cst_33 = arith.constant 0.000000e+00 : f32
      %51 = vector.broadcast %cst_33 : f32 to vector<16x32xf32>
      %c0_34 = arith.constant 0 : index
      %c0_35 = arith.constant 0 : index
      %52 = vector.load %arg19[%c0_34, %c0_35] : memref<16x32xf32, #tpu.memory_space<vmem>>, vector<16x32xf32>
      tpu.vector_store %arg19[%c0_34, %c0_35], %51 {strides = array<i32>} : memref<16x32xf32, #tpu.memory_space<vmem>>, vector<16x32xf32>,
      %cst_36 = arith.constant -1.000000e+30 : f32
      %c0_i32_37 = arith.constant 0 : i32
      %c4_i32 = arith.constant 4 : i32
      %53 = arith.addi %c0_i32_37, %c4_i32 : i32
      %c1_i32 = arith.constant 1 : i32
      scf.for %arg23 = %c0_i32_37 to %53 step %c1_i32  : i32 {
        %76 = arith.index_cast %arg23 : i32 to index
        %c0_53 = arith.constant 0 : index
        %c0_54 = arith.constant 0 : index
        %77 = vector.load %arg4[%76, %c0_53, %c0_54] : memref<4x32x8xbf16, #tpu.memory_space<vmem>>, vector<1x32x8xbf16>
        %78 = vector.shape_cast %77 : vector<1x32x8xbf16> to vector<32x8xbf16>
        %cst_55 = arith.constant dense<0.000000e+00> : vector<16x8xf32>
        %79 = tpu.matmul %43, %78, %cst_55 {dimension_numbers = #tpu.dot_dimension_numbers<[1], [0], [0], [1], [0, 0, 1, 1], [], []>} : vector<16x32xbf16>, vector<32x8xbf16>, vector<16x8xf32> -> vector<16x8xf32>
        %c0_56 = arith.constant 0 : index
        %c0_57 = arith.constant 0 : index
        %80 = vector.load %arg15[%c0_56, %c0_57] : memref<16x8xf32, #tpu.memory_space<vmem>>, vector<16x8xf32>
        tpu.vector_store %arg15[%c0_56, %c0_57], %79 {strides = array<i32>} : memref<16x8xf32, #tpu.memory_space<vmem>>, vector<16x8xf32>,
        %81 = arith.index_cast %arg23 : i32 to index
        %c0_58 = arith.constant 0 : index
        %c0_59 = arith.constant 0 : index
        %82 = vector.load %arg5[%81, %c0_58, %c0_59] : memref<4x32x8xbf16, #tpu.memory_space<vmem>>, vector<1x32x8xbf16>
        %83 = vector.shape_cast %82 : vector<1x32x8xbf16> to vector<32x8xbf16>
        %cst_60 = arith.constant dense<0.000000e+00> : vector<16x8xf32>
        %84 = tpu.matmul %43, %83, %cst_60 {dimension_numbers = #tpu.dot_dimension_numbers<[1], [0], [0], [1], [0, 0, 1, 1], [], []>} : vector<16x32xbf16>, vector<32x8xbf16>, vector<16x8xf32> -> vector<16x8xf32>
        %c0_61 = arith.constant 0 : index
        %c0_62 = arith.constant 0 : index
        %85 = vector.load %arg16[%c0_61, %c0_62] : memref<16x8xf32, #tpu.memory_space<vmem>>, vector<16x8xf32>
        tpu.vector_store %arg16[%c0_61, %c0_62], %84 {strides = array<i32>} : memref<16x8xf32, #tpu.memory_space<vmem>>, vector<16x8xf32>,
        %86 = arith.index_cast %arg23 : i32 to index
        %c0_63 = arith.constant 0 : index
        %c0_64 = arith.constant 0 : index
        %87 = vector.load %arg6[%86, %c0_63, %c0_64] : memref<4x32x8xbf16, #tpu.memory_space<vmem>>, vector<1x32x8xbf16>
        %88 = vector.shape_cast %87 : vector<1x32x8xbf16> to vector<32x8xbf16>
        %cst_65 = arith.constant dense<0.000000e+00> : vector<16x8xf32>
        %89 = tpu.matmul %43, %88, %cst_65 {dimension_numbers = #tpu.dot_dimension_numbers<[1], [0], [0], [1], [0, 0, 1, 1], [], []>} : vector<16x32xbf16>, vector<32x8xbf16>, vector<16x8xf32> -> vector<16x8xf32>
        %c0_66 = arith.constant 0 : index
        %c0_67 = arith.constant 0 : index
        %90 = vector.load %arg17[%c0_66, %c0_67] : memref<16x8xf32, #tpu.memory_space<vmem>>, vector<16x8xf32>
        tpu.vector_store %arg17[%c0_66, %c0_67], %89 {strides = array<i32>} : memref<16x8xf32, #tpu.memory_space<vmem>>, vector<16x8xf32>,
        %c0_i32_68 = arith.constant 0 : i32
        %c2_i32 = arith.constant 2 : i32
        %91 = arith.addi %c0_i32_68, %c2_i32 : i32
        %c1_i32_69 = arith.constant 1 : i32
        scf.for %arg24 = %c0_i32_68 to %91 step %c1_i32_69  : i32 {
          %c8_i32 = arith.constant 8 : i32
          %100 = arith.muli %arg24, %c8_i32 : i32
          %101 = tpu.assume_multiple %100, 8 : i32
          %102 = arith.index_cast %101 : i32 to index
          %c0_80 = arith.constant 0 : index
          %103 = vector.load %arg15[%102, %c0_80] : memref<16x8xf32, #tpu.memory_space<vmem>>, vector<8x8xf32>
          %104 = arith.index_cast %101 : i32 to index
          %c0_81 = arith.constant 0 : index
          %105 = vector.load %arg16[%104, %c0_81] : memref<16x8xf32, #tpu.memory_space<vmem>>, vector<8x8xf32>
          %106 = arith.index_cast %101 : i32 to index
          %c0_82 = arith.constant 0 : index
          %107 = vector.load %arg17[%106, %c0_82] : memref<16x8xf32, #tpu.memory_space<vmem>>, vector<8x8xf32>
          %108 = vector.extract_strided_slice %103 {offsets = [0, 4], sizes = [8, 4], strides = [1, 1]} : vector<8x8xf32> to vector<8x4xf32>
          %cst_83 = arith.constant 0.000000e+00 : f32
          %109 = vector.broadcast %cst_83 : f32 to vector<8x4xf32>
          %110 = arith.subf %109, %108 : vector<8x4xf32>
          %111 = vector.extract_strided_slice %103 {offsets = [0, 0], sizes = [8, 4], strides = [1, 1]} : vector<8x8xf32> to vector<8x4xf32>
          %112 = tpu.concatenate %110, %111 in 1 : vector<8x4xf32>, vector<8x4xf32> -> vector<8x8xf32>
          %113 = vector.extract_strided_slice %105 {offsets = [0, 4], sizes = [8, 4], strides = [1, 1]} : vector<8x8xf32> to vector<8x4xf32>
          %cst_84 = arith.constant 0.000000e+00 : f32
          %114 = vector.broadcast %cst_84 : f32 to vector<8x4xf32>
          %115 = arith.subf %114, %113 : vector<8x4xf32>
          %116 = vector.extract_strided_slice %105 {offsets = [0, 0], sizes = [8, 4], strides = [1, 1]} : vector<8x8xf32> to vector<8x4xf32>
          %117 = tpu.concatenate %115, %116 in 1 : vector<8x4xf32>, vector<8x4xf32> -> vector<8x8xf32>
          %118 = arith.mulf %103, %48 : vector<8x8xf32>
          %119 = arith.mulf %112, %50 : vector<8x8xf32>
          %120 = arith.addf %118, %119 : vector<8x8xf32>
          %121 = arith.mulf %105, %48 : vector<8x8xf32>
          %122 = arith.mulf %117, %50 : vector<8x8xf32>
          %123 = arith.addf %121, %122 : vector<8x8xf32>
          %124 = arith.truncf %120 : vector<8x8xf32> to vector<8x8xbf16>
          %125 = arith.truncf %123 : vector<8x8xf32> to vector<8x8xbf16>
          %cst_85 = arith.constant dense<0.000000e+00> : vector<8x8xf32>
          %126 = tpu.matmul %124, %125, %cst_85 {dimension_numbers = #tpu.dot_dimension_numbers<[1], [1], [0], [0], [0, 0, 1, 0], [], []>} : vector<8x8xbf16>, vector<8x8xbf16>, vector<8x8xf32> -> vector<8x8xf32>
          %127 = vector.broadcast %cst_36 : f32 to vector<8x8xf32>
          %128 = arith.select %46, %126, %127 : vector<8x8xi1>, vector<8x8xf32>
          %cst_86 = arith.constant dense<0xFF800000> : vector<8xf32>
          %129 = vector.multi_reduction <maximumf>, %128, %cst_86 [1] : vector<8x8xf32> to vector<8xf32>
          %130 = vector.shape_cast %129 : vector<8xf32> to vector<8x1xf32>
          %131 = vector.broadcast %130 : vector<8x1xf32> to vector<8x8xf32>
          %132 = arith.subf %128, %131 : vector<8x8xf32>
          %133 = math.exp %132 : vector<8x8xf32>
          %cst_87 = arith.constant dense<0.000000e+00> : vector<8xf32>
          %134 = vector.multi_reduction <add>, %133, %cst_87 [1] : vector<8x8xf32> to vector<8xf32>
          %135 = vector.shape_cast %134 : vector<8xf32> to vector<8x1xf32>
          %136 = arith.truncf %133 : vector<8x8xf32> to vector<8x8xbf16>
          %137 = arith.truncf %107 : vector<8x8xf32> to vector<8x8xbf16>
          %cst_88 = arith.constant dense<0.000000e+00> : vector<8x8xf32>
          %138 = tpu.matmul %136, %137, %cst_88 {dimension_numbers = #tpu.dot_dimension_numbers<[1], [0], [0], [1], [0, 0, 1, 1], [], []>} : vector<8x8xbf16>, vector<8x8xbf16>, vector<8x8xf32> -> vector<8x8xf32>
          %cst_89 = arith.constant 1.000000e+00 : f32
          %139 = vector.broadcast %cst_89 : f32 to vector<8x1xf32>
          %140 = arith.divf %139, %135 : vector<8x1xf32>
          %141 = vector.broadcast %140 : vector<8x1xf32> to vector<8x8xf32>
          %142 = arith.mulf %138, %141 : vector<8x8xf32>
          %143 = arith.truncf %142 : vector<8x8xf32> to vector<8x8xbf16>
          %144 = arith.index_cast %101 : i32 to index
          %c0_90 = arith.constant 0 : index
          %145 = vector.load %arg18[%144, %c0_90] : memref<16x8xbf16, #tpu.memory_space<vmem>>, vector<8x8xbf16>
          tpu.vector_store %arg18[%144, %c0_90], %143 {strides = array<i32>} : memref<16x8xbf16, #tpu.memory_space<vmem>>, vector<8x8xbf16>,
        }
        %c2_i32_70 = arith.constant 2 : i32
        %c0_71 = arith.constant 0 : index
        %c0_72 = arith.constant 0 : index
        %92 = vector.load %arg19[%c0_71, %c0_72] : memref<16x32xf32, #tpu.memory_space<vmem>>, vector<16x32xf32>
        %c0_73 = arith.constant 0 : index
        %c0_74 = arith.constant 0 : index
        %93 = vector.load %arg18[%c0_73, %c0_74] : memref<16x8xbf16, #tpu.memory_space<vmem>>, vector<16x8xbf16>
        %94 = arith.index_cast %arg23 : i32 to index
        %c0_75 = arith.constant 0 : index
        %c0_76 = arith.constant 0 : index
        %95 = vector.load %arg7[%94, %c0_75, %c0_76] : memref<4x8x32xbf16, #tpu.memory_space<vmem>>, vector<1x8x32xbf16>
        %96 = vector.shape_cast %95 : vector<1x8x32xbf16> to vector<8x32xbf16>
        %cst_77 = arith.constant dense<0.000000e+00> : vector<16x32xf32>
        %97 = tpu.matmul %93, %96, %cst_77 {dimension_numbers = #tpu.dot_dimension_numbers<[1], [0], [0], [1], [0, 0, 1, 1], [], []>} : vector<16x8xbf16>, vector<8x32xbf16>, vector<16x32xf32> -> vector<16x32xf32>
        %98 = arith.addf %92, %97 : vector<16x32xf32>
        %c0_78 = arith.constant 0 : index
        %c0_79 = arith.constant 0 : index
        %99 = vector.load %arg19[%c0_78, %c0_79] : memref<16x32xf32, #tpu.memory_space<vmem>>, vector<16x32xf32>
        tpu.vector_store %arg19[%c0_78, %c0_79], %98 {strides = array<i32>} : memref<16x32xf32, #tpu.memory_space<vmem>>, vector<16x32xf32>,
      }
      %c4_i32_38 = arith.constant 4 : i32
      %c0_39 = arith.constant 0 : index
      %c0_40 = arith.constant 0 : index
      %54 = vector.load %arg19[%c0_39, %c0_40] : memref<16x32xf32, #tpu.memory_space<vmem>>, vector<16x32xf32>
      %55 = arith.addf %27, %54 : vector<16x32xf32>
      %c0_41 = arith.constant 0 : index
      %c0_42 = arith.constant 0 : index
      %56 = vector.load %arg20[%c0_41, %c0_42] : memref<16x32xf32, #tpu.memory_space<vmem>>, vector<16x32xf32>
      tpu.vector_store %arg20[%c0_41, %c0_42], %55 {strides = array<i32>} : memref<16x32xf32, #tpu.memory_space<vmem>>, vector<16x32xf32>,
      %57 = arith.mulf %55, %55 : vector<16x32xf32>
      %cst_43 = arith.constant dense<0.000000e+00> : vector<16xf32>
      %58 = vector.multi_reduction <add>, %57, %cst_43 [1] : vector<16x32xf32> to vector<16xf32>
      %59 = vector.shape_cast %58 : vector<16xf32> to vector<16x1xf32>
      %cst_44 = arith.constant 3.200000e+01 : f32
      %60 = vector.broadcast %cst_44 : f32 to vector<16x1xf32>
      %61 = arith.divf %59, %60 : vector<16x1xf32>
      %cst_45 = arith.constant 9.99999974E-6 : f32
      %62 = vector.broadcast %cst_45 : f32 to vector<16x1xf32>
      %63 = arith.addf %61, %62 : vector<16x1xf32>
      %64 = math.rsqrt %63 : vector<16x1xf32>
      %65 = vector.broadcast %64 : vector<16x1xf32> to vector<16x32xf32>
      %66 = arith.mulf %55, %65 : vector<16x32xf32>
      %c0_46 = arith.constant 0 : index
      %c0_47 = arith.constant 0 : index
      %67 = vector.load %arg8[%c0_46, %c0_47] : memref<1x32xf32, #tpu.memory_space<vmem>>, vector<1x32xf32>
      %68 = vector.shape_cast %67 : vector<1x32xf32> to vector<32xf32>
      %69 = vector.shape_cast %68 : vector<32xf32> to vector<1x32xf32>
      %70 = vector.broadcast %69 : vector<1x32xf32> to vector<16x32xf32>
      %71 = arith.mulf %66, %70 : vector<16x32xf32>
      %72 = arith.truncf %71 : vector<16x32xf32> to vector<16x32xbf16>
      %c0_48 = arith.constant 0 : index
      %c0_49 = arith.constant 0 : index
      %73 = vector.load %arg21[%c0_48, %c0_49] : memref<16x32xbf16, #tpu.memory_space<vmem>>, vector<16x32xbf16>
      tpu.vector_store %arg21[%c0_48, %c0_49], %72 {strides = array<i32>} : memref<16x32xbf16, #tpu.memory_space<vmem>>, vector<16x32xbf16>,
      %cst_50 = arith.constant 0.000000e+00 : f32
      %74 = vector.broadcast %cst_50 : f32 to vector<16x32xf32>
      %c0_51 = arith.constant 0 : index
      %c0_52 = arith.constant 0 : index
      %75 = vector.load %arg22[%c0_51, %c0_52] : memref<16x32xf32, #tpu.memory_space<vmem>>, vector<16x32xf32>
      tpu.vector_store %arg22[%c0_51, %c0_52], %74 {strides = array<i32>} : memref<16x32xf32, #tpu.memory_space<vmem>>, vector<16x32xf32>,
    } else {
    }
    %c0 = arith.constant 0 : index
    %c0_1 = arith.constant 0 : index
    %3 = vector.load %arg21[%c0, %c0_1] : memref<16x32xbf16, #tpu.memory_space<vmem>>, vector<16x32xbf16>
    %c0_2 = arith.constant 0 : index
    %c0_3 = arith.constant 0 : index
    %4 = vector.load %arg9[%c0_2, %c0_3] : memref<32x64xbf16, #tpu.memory_space<vmem>>, vector<32x64xbf16>
    %cst = arith.constant dense<0.000000e+00> : vector<16x64xf32>
    %5 = tpu.matmul %3, %4, %cst {dimension_numbers = #tpu.dot_dimension_numbers<[1], [0], [0], [1], [0, 0, 1, 1], [], []>} : vector<16x32xbf16>, vector<32x64xbf16>, vector<16x64xf32> -> vector<16x64xf32>
    %c0_4 = arith.constant 0 : index
    %c0_5 = arith.constant 0 : index
    %6 = vector.load %arg10[%c0_4, %c0_5] : memref<32x64xbf16, #tpu.memory_space<vmem>>, vector<32x64xbf16>
    %cst_6 = arith.constant dense<0.000000e+00> : vector<16x64xf32>
    %7 = tpu.matmul %3, %6, %cst_6 {dimension_numbers = #tpu.dot_dimension_numbers<[1], [0], [0], [1], [0, 0, 1, 1], [], []>} : vector<16x32xbf16>, vector<32x64xbf16>, vector<16x64xf32> -> vector<16x64xf32>
    %cst_7 = arith.constant 5.000000e-01 : f32
    %8 = vector.broadcast %cst_7 : f32 to vector<16x64xf32>
    %9 = arith.mulf %8, %5 : vector<16x64xf32>
    %10 = math.tanh %9 : vector<16x64xf32>
    %cst_8 = arith.constant 1.000000e+00 : f32
    %11 = vector.broadcast %cst_8 : f32 to vector<16x64xf32>
    %12 = arith.addf %10, %11 : vector<16x64xf32>
    %cst_9 = arith.constant 5.000000e-01 : f32
    %13 = vector.broadcast %cst_9 : f32 to vector<16x64xf32>
    %14 = arith.mulf %13, %12 : vector<16x64xf32>
    %15 = arith.mulf %5, %14 : vector<16x64xf32>
    %c0_10 = arith.constant 0 : index
    %c0_11 = arith.constant 0 : index
    %16 = vector.load %arg22[%c0_10, %c0_11] : memref<16x32xf32, #tpu.memory_space<vmem>>, vector<16x32xf32>
    %17 = arith.mulf %15, %7 : vector<16x64xf32>
    %18 = arith.truncf %17 : vector<16x64xf32> to vector<16x64xbf16>
    %c0_12 = arith.constant 0 : index
    %c0_13 = arith.constant 0 : index
    %19 = vector.load %arg11[%c0_12, %c0_13] : memref<64x32xbf16, #tpu.memory_space<vmem>>, vector<64x32xbf16>
    %cst_14 = arith.constant dense<0.000000e+00> : vector<16x32xf32>
    %20 = tpu.matmul %18, %19, %cst_14 {dimension_numbers = #tpu.dot_dimension_numbers<[1], [0], [0], [1], [0, 0, 1, 1], [], []>} : vector<16x64xbf16>, vector<64x32xbf16>, vector<16x32xf32> -> vector<16x32xf32>
    %21 = arith.addf %16, %20 : vector<16x32xf32>
    %c0_15 = arith.constant 0 : index
    %c0_16 = arith.constant 0 : index
    %22 = vector.load %arg22[%c0_15, %c0_16] : memref<16x32xf32, #tpu.memory_space<vmem>>, vector<16x32xf32>
    tpu.vector_store %arg22[%c0_15, %c0_16], %21 {strides = array<i32>} : memref<16x32xf32, #tpu.memory_space<vmem>>, vector<16x32xf32>,
    %c0_i32_17 = arith.constant 0 : i32
    %23 = arith.cmpi eq, %arg1, %c0_i32_17 : i32
    %24 = arith.extui %23 : i1 to i32
    %c0_i32_18 = arith.constant 0 : i32
    %25 = arith.cmpi ne, %24, %c0_i32_18 : i32
    scf.if %25 {
      %c0_19 = arith.constant 0 : index
      %c0_20 = arith.constant 0 : index
      %26 = vector.load %arg20[%c0_19, %c0_20] : memref<16x32xf32, #tpu.memory_space<vmem>>, vector<16x32xf32>
      %c0_21 = arith.constant 0 : index
      %c0_22 = arith.constant 0 : index
      %27 = vector.load %arg22[%c0_21, %c0_22] : memref<16x32xf32, #tpu.memory_space<vmem>>, vector<16x32xf32>
      %28 = arith.addf %26, %27 : vector<16x32xf32>
      %29 = vector.shape_cast %28 : vector<16x32xf32> to vector<2x8x32xf32>
      %c0_23 = arith.constant 0 : index
      %c0_24 = arith.constant 0 : index
      %c0_25 = arith.constant 0 : index
      %30 = vector.load %arg14[%c0_23, %c0_24, %c0_25] : memref<2x8x32xf32, #tpu.memory_space<vmem>>, vector<2x8x32xf32>
      tpu.vector_store %arg14[%c0_23, %c0_24, %c0_25], %29 {strides = array<i32>} : memref<2x8x32xf32, #tpu.memory_space<vmem>>, vector<2x8x32xf32>,
    } else {
    }
    return
  }
  func.func @transform_0(%arg0: i32, %arg1: i32) -> (i32, i32, i32) {
    %c0_i32 = arith.constant 0 : i32
    %c0_i32_0 = arith.constant 0 : i32
    %c0_i32_1 = arith.constant 0 : i32
    return %arg0, %c0_i32, %c0_i32_0 : i32, i32, i32
  }
  func.func @transform_1(%arg0: i32, %arg1: i32) -> (i32, i32) {
    %c0_i32 = arith.constant 0 : i32
    %c0_i32_0 = arith.constant 0 : i32
    %c0_i32_1 = arith.constant 0 : i32
    return %c0_i32, %c0_i32_0 : i32, i32
  }
  func.func @transform_2(%arg0: i32, %arg1: i32) -> (i32, i32, i32) {
    %c0_i32 = arith.constant 0 : i32
    %c0_i32_0 = arith.constant 0 : i32
    %c0_i32_1 = arith.constant 0 : i32
    %c0_i32_2 = arith.constant 0 : i32
    return %c0_i32, %c0_i32_0, %c0_i32_1 : i32, i32, i32
  }
  func.func @transform_3(%arg0: i32, %arg1: i32) -> (i32, i32, i32) {
    %c0_i32 = arith.constant 0 : i32
    %c0_i32_0 = arith.constant 0 : i32
    %c0_i32_1 = arith.constant 0 : i32
    %c0_i32_2 = arith.constant 0 : i32
    return %c0_i32, %c0_i32_0, %c0_i32_1 : i32, i32, i32
  }
  func.func @transform_4(%arg0: i32, %arg1: i32) -> (i32, i32, i32) {
    %c0_i32 = arith.constant 0 : i32
    %c0_i32_0 = arith.constant 0 : i32
    %c0_i32_1 = arith.constant 0 : i32
    %c0_i32_2 = arith.constant 0 : i32
    return %c0_i32, %c0_i32_0, %c0_i32_1 : i32, i32, i32
  }
  func.func @transform_5(%arg0: i32, %arg1: i32) -> (i32, i32, i32) {
    %c0_i32 = arith.constant 0 : i32
    %c0_i32_0 = arith.constant 0 : i32
    %c0_i32_1 = arith.constant 0 : i32
    %c0_i32_2 = arith.constant 0 : i32
    return %c0_i32, %c0_i32_0, %c0_i32_1 : i32, i32, i32
  }
  func.func @transform_6(%arg0: i32, %arg1: i32) -> (i32, i32) {
    %c0_i32 = arith.constant 0 : i32
    %c0_i32_0 = arith.constant 0 : i32
    %c0_i32_1 = arith.constant 0 : i32
    return %c0_i32, %c0_i32_0 : i32, i32
  }
  func.func @transform_7(%arg0: i32, %arg1: i32) -> (i32, i32) {
    %c0_i32 = arith.constant 0 : i32
    %c0_i32_0 = arith.constant 0 : i32
    return %c0_i32, %arg1 : i32, i32
  }
  func.func @transform_8(%arg0: i32, %arg1: i32) -> (i32, i32) {
    %c0_i32 = arith.constant 0 : i32
    %c0_i32_0 = arith.constant 0 : i32
    return %c0_i32, %arg1 : i32, i32
  }
  func.func @transform_9(%arg0: i32, %arg1: i32) -> (i32, i32) {
    %c0_i32 = arith.constant 0 : i32
    %c0_i32_0 = arith.constant 0 : i32
    return %arg1, %c0_i32 : i32, i32
  }
  func.func @transform_10(%arg0: i32, %arg1: i32) -> (i32, i32, i32) {
    %c0_i32 = arith.constant 0 : i32
    %c0_i32_0 = arith.constant 0 : i32
    %c0_i32_1 = arith.constant 0 : i32
    %c0_i32_2 = arith.constant 0 : i32
    return %c0_i32, %c0_i32_0, %c0_i32_1 : i32, i32, i32
  }
  func.func @transform_11(%arg0: i32, %arg1: i32) -> (i32, i32, i32) {
    %c0_i32 = arith.constant 0 : i32
    %c0_i32_0 = arith.constant 0 : i32
    %c0_i32_1 = arith.constant 0 : i32
    %c0_i32_2 = arith.constant 0 : i32
    return %c0_i32, %c0_i32_0, %c0_i32_1 : i32, i32, i32
  }
  func.func @transform_12(%arg0: i32, %arg1: i32) -> (i32, i32, i32) {
    %c0_i32 = arith.constant 0 : i32
    %c0_i32_0 = arith.constant 0 : i32
    %c0_i32_1 = arith.constant 0 : i32
    return %arg0, %c0_i32, %c0_i32_0 : i32, i32, i32
  }
}

</mosaic_0001>

<bundles_post_ra>
// kernel: tpu_custom_call.1
= control target key start
LH: loop header
LB: loop body
LE: loop exit
PB: predicated region body
PF: predicated region fallthrough
CT: control target
= control target key end

     0   :  { %vm51_vm0 = vcmask 261120   ;;  %v805_v2 = vmov 0.0   ;;  %s1038_s0 = inlined_call_operand.vmem [shape: f32[2,8,32], index: 0, kind: input, shape index: {}]   ;;  %s1039_s1 = inlined_call_operand.vmem [shape: f32[1,32], index: 1, kind: input, shape index: {}]   ;;  %s1040_s2 = inlined_call_operand.vmem [shape: bf16[4,32,8], index: 2, kind: input, shape index: {}]   ;;  %s1041_s3 = inlined_call_operand.vmem [shape: bf16[4,32,8], index: 3, kind: input, shape index: {}]   ;;  %s1042_s4 = inlined_call_operand.vmem [shape: bf16[4,32,8], index: 4, kind: input, shape index: {}]   ;;  %s1043_s5 = inlined_call_operand.vmem [shape: bf16[4,8,32], index: 5, kind: input, shape index: {}]   ;;  %s1044_s6 = inlined_call_operand.vmem [shape: f32[1,32], index: 6, kind: input, shape index: {}]   ;;  %s1045_s7 = inlined_call_operand.vmem [shape: bf16[32,64], index: 7, kind: input, shape index: {}]   ;;  %s1046_s8 = inlined_call_operand.vmem [shape: bf16[32,64], index: 8, kind: input, shape index: {}]   ;;  %s1047_s9 = inlined_call_operand.vmem [shape: bf16[64,32], index: 9, kind: input, shape index: {}]   ;;  %s1048_s10 = inlined_call_operand.vmem [shape: f32[1,8,8], index: 10, kind: input, shape index: {}]   ;;  %s1049_s11 = inlined_call_operand.vmem [shape: f32[1,8,8], index: 11, kind: input, shape index: {}]   ;;  %s1050_s12 = inlined_call_operand.hbm [shape: f32[2,8,32], index: 12, kind: output, shape index: {}]  }
   0x1   :  { %v880_v0 = vld [vmem:[%s1038_s0] sm:$0xff]  ;;  %105 = vst.msk [vmem:[#allocation6] sm:$0xff] %vm51_vm0, %v805_v2  ;;  %v891_v3 = vld [vmem:[%s1038_s0 + $0x8] sm:$0xff] }
   0x2   :  { %v49_v1 = vmul.f32 %v880_v0, %v880_v0  ;;  %106 = vst.msk [vmem:[#allocation6 + $0x8] sm:$0xff] %vm51_vm0, %v805_v2 }
   0x3   :  { %17 = vsyncpa [#allocation11], 0  ;;  %v50_v5 = vmul.f32 %v891_v3, %v891_v3  ;;  %v806_v7 = vmov 32.0   ;;  %v98_v14 = vlaneseq  ;;  %v909_v20 = vld [vmem:[%s1048_s10] sm:$0xff]  ;;  %s924_s28 = smov 0  }
   0x4   :  { %v52_v4 = vsel %vm51_vm0, %v49_v1, 0.0  ;;  %744 = vrcp.f32 %v806_v7  ;;  %v914_v21 = vld [vmem:[%s1049_s11] sm:$0xff] }
   0x5   :  { %53 = vadd.xlane.f32.xlu0 %v52_v4  ;;  %v55_v6 = vsel %vm51_vm0, %v50_v5, 0.0  ;;  %v900_v17 = vshrl.u32 %v98_v14, 7  ;;  %v902_v18 = vand.u32 127, %v98_v14  ;;  %v743_v38 = vld [vmem:[%s1039_s1] ss:$0 sm:$0xff] }
   0x7   :  { %vm102_vm2 = vcmp.ge.s32.totalorder %v900_v17, %v902_v18 }
   0xa   :  { %v745_v8 = vpop.eup %744 }
   0xb   :  { %v59_v9 = vmul.f32 32.0, %v745_v8  ;;  %vm63_vm1 = vweird.f32 %v745_v8 }
   0xd   :  { %56 = vadd.xlane.f32.xlu0 %v55_v6  ;;  %v60_v10 = vsub.f32 1.0, %v59_v9 }
   0xf   :  { %v61_v11 = vmul.f32 %v745_v8, %v60_v10 }
  0x11   :  { %v62_v12 = vadd.f32 %v745_v8, %v61_v11 }
  0x13   :  { %v897_v13 = vsel %vm63_vm1, %v745_v8, %v62_v12 }
  0x78   :  { %v54_v15 = vpop.xlane.xlu0 %53 }
  0x79   :  { %v65_v16 = vmul.f32 %v897_v13, %v54_v15 }
  0x7b   :  { %v67_v19 = vadd.f32 1e-05, %v65_v16 }
  0x7d   :  { %746 = vrsqrt.f32 %v67_v19  ;;  %vm75_vm4 = vweird.f32 %v67_v19 }
  0x80   :  { %v57_v22 = vpop.xlane.xlu0 %56 }
  0x81   :  { %v66_v23 = vmul.f32 %v897_v13, %v57_v22 }
  0x83   :  { %v747_v24 = vpop.eup %746  ;;  %v68_v25 = vadd.f32 1e-05, %v66_v23 }
  0x84   :  { %v70_v26 = vmul.f32 %v747_v24, %v67_v19  ;;  %vm76_vm3 = vweird.f32 %v747_v24 }
  0x85   :  { %748 = vrsqrt.f32 %v68_v25  ;;  %vm77_vm5 = vmor %vm75_vm4, %vm76_vm3  ;;  %vm85_vm7 = vweird.f32 %v68_v25 }
  0x86   :  { %v71_v27 = vmul.f32 %v747_v24, %v70_v26 }
  0x88   :  { %v72_v28 = vmul.f32 0.5, %v71_v27 }
  0x8a   :  { %v73_v29 = vsub.f32 1.5, %v72_v28 }
  0x8b   :  { %v749_v30 = vpop.eup %748 }
  0x8c   :  { %v80_v31 = vmul.f32 %v749_v30, %v68_v25  ;;  %v74_v32 = vmul.f32 %v747_v24, %v73_v29  ;;  %vm86_vm6 = vweird.f32 %v749_v30 }
  0x8d   :  { %vm87_vm8 = vmor %vm85_vm7, %vm86_vm6 }
  0x8e   :  { %v81_v33 = vmul.f32 %v749_v30, %v80_v31  ;;  %v78_v35 = vsel %vm77_vm5, %v747_v24, %v74_v32 }
  0x8f   :  { %v89_v39 = vmul.f32 %v78_v35, %v880_v0 }
  0x90   :  { %v82_v34 = vmul.f32 0.5, %v81_v33 }
  0x91   :  { %v95_v42 = vmul.f32 %v743_v38, %v89_v39 }
  0x92   :  { %v83_v36 = vsub.f32 1.5, %v82_v34 }
  0x94   :  { %v84_v37 = vmul.f32 %v749_v30, %v83_v36 }
  0x96   :  { %v88_v40 = vsel %vm87_vm8, %v749_v30, %v84_v37 }
  0x97   :  { %v90_v41 = vmul.f32 %v88_v40, %v891_v3 }
  0x99   :  { %v96_v43 = vmul.f32 %v743_v38, %v90_v41 }
  0x9b   :  { %v922_v44 = vpack.c.bf16 %v96_v43, %v95_v42 }
  0x9c LB: > { %s701_s29 = sshll.u32 %s799_s28, 4  ;;  %vm149_vm9 = vcmask 64512   ;;  %s951_s20 = smov 0   ;;  %s799_s28 = sphi %s924_s28, %s112_s28  }
  0x9d   : > { %s115_s13 = scalar_lea.vmem %s1040_s2, %s701_s29  ;;  %s153_s16 = scalar_lea.vmem %s1041_s3, %s701_s29 }
  0x9e   : > { %v703_v45 = vld [vmem:[%s115_s13 + $0x8] sm:$0xff]  ;;  %s187_s19 = scalar_lea.vmem %s1042_s4, %s701_s29  ;;  %v702_v48 = vld [vmem:[%s115_s13] sm:$0xff] }
  0x9f   : > { %v706_v46 = vld [vmem:[%s153_s16 + $0x8] sm:$0xff]  ;;  %141 = vmatpush.bf16.msra.mxu0 %v703_v45  ;;  %v705_v49 = vld [vmem:[%s153_s16] sm:$0xff] }
  0xa0   : > { %v709_v47 = vld [vmem:[%s187_s19 + $0x8] sm:$0xff]  ;;  %176 = vmatpush.bf16.msra.mxu1 %v706_v46  ;;  %v708_v50 = vld [vmem:[%s187_s19] sm:$0xff] }
  0xa1   : > { %210 = vmatpush.bf16.msra.mxu2 %v709_v47 }
  0xa3   : > { %142 = vmatpush.bf16.msra.mxu0 %v702_v48 }
  0xa4   : > { %177 = vmatpush.bf16.msra.mxu1 %v705_v49 }
  0xa5   : > { %211 = vmatpush.bf16.msra.mxu2 %v708_v50 }
  0xa6   : > { %631 = vmatmul.msk.bf16.vlgmr.msra.gmra.mxu0 %vm51_vm0, %v922_v44 }
  0xa7   : > { %641 = vmatmul.msk.bf16.vlgmr.msra.gmra.mxu1 %vm51_vm0, %v922_v44 }
  0xa8   : > { %651 = vmatmul.msk.bf16.vlgmr.msra.gmra.mxu2 %vm51_vm0, %v922_v44 }
 0x123   : > { %v144_v51 = vpop.f32.mrf.mxu0 }
 0x124   : > { %v179_v52 = vpop.f32.mrf.mxu1  ;;  %150 = vst.msk [vmem:[#allocation2] sm:$0xff] %vm149_vm9, %v144_v51 }
 0x125   : > { %184 = vst.msk [vmem:[#allocation3] sm:$0xff] %vm149_vm9, %v179_v52 }
 0x12b   : > { %v213_v53 = vpop.f32.mrf.mxu2  ;;  %v146_v54 = vpop.f32.mrf.mxu0 }
 0x12c   : > { %218 = vst.msk [vmem:[#allocation4] sm:$0xff] %vm149_vm9, %v213_v53  ;;  %v181_v55 = vpop.f32.mrf.mxu1 }
 0x12d   : > { %151 = vst.msk [vmem:[#allocation2 + $0x8] sm:$0xff] %vm149_vm9, %v146_v54 }
 0x12e   : > { %185 = vst.msk [vmem:[#allocation3 + $0x8] sm:$0xff] %vm149_vm9, %v181_v55 }
 0x133   : > { %v215_v56 = vpop.f32.mrf.mxu2 }
 0x134   : > { %219 = vst.msk [vmem:[#allocation4 + $0x8] sm:$0xff] %vm149_vm9, %v215_v56 }
 0x135 LB: >> { %s957_s21 = sshll.u32 %s803_s20, 3  ;;  %s807_s24 = smov 124   ;;  %vm242_vm10 = vcmask 31744   ;;  %vm296_vm11 = vcmask 1043456   ;;  %vm334_vm1 = vcmask 60416   ;;  %s803_s20 = sphi %s951_s20, %s225_s20  }
 0x136   : >> { %s229_s22 = scalar_lea.vmem [#allocation3], %s957_s21  ;;  %s227_s23 = scalar_lea.vmem [#allocation2], %s957_s21 }
 0x137   : >> { %v230_v57 = vld [vmem:[%s229_s22] sm:$0xff]  ;;  %s808_s0 = smov 4   ;;  %s231_s25 = scalar_lea.vmem [#allocation4], %s957_s21 }
 0x138   : >> { %v228_v58 = vld [vmem:[%s227_s23] sm:$0xff]  ;;  %v244_v59 = vsub.f32 0.0, %v230_v57  ;;  %v257_v4 = vmul.f32 %v230_v57, %v909_v20  ;;  %s330_s26 = sshra.s32 %s957_s21, 3  ;;  %s225_s20 = sadd.s32 1, %s803_s20  }
 0x139   : >> { %v233_v60 = vsub.f32 0.0, %v228_v58  ;;  %v254_v11 = vmul.f32 %v228_v58, %v909_v20  ;;  %s655_s27 = sshll.u32 %s330_s26, 2  ;;  %p222_p0 = scmp.ge.s32.totalorder %s225_s20, 2  }
 0x13a   : >> { %246 = vrot.lane.b32.xlu0 %v244_v59, %s807_s24  ;;  %s333_s10 = scalar_lea.vmem [#allocation5], %s655_s27  ;;  %s656_s11 = sshll.u32 (%p222_p0), %s799_s28, 2  ;;  %v336_v52 = vld [vmem:[#allocation6] sm:$0xff] (%p222_p0)  ;;  %v337_v55 = vld [vmem:[#allocation6 + $0x8] sm:$0xff] (%p222_p0) }
 0x13b   : >> { %235 = vrot.lane.b32.xlu1 %v233_v60, %s807_s24  ;;  %v232_v24 = vld [vmem:[%s231_s25] sm:$0xff]  ;;  %s341_s30 = scalar_lea.vmem (%p222_p0), %s1043_s5, %s656_s11  ;;  %s112_s28 = sadd.s32 (%p222_p0), 1, %s799_s28  }
 0x13c   : >> { %v292_v25 = vpack.c.bf16 %v232_v24, %v232_v24  ;;  %v342_v49 = vld [vmem:[%s341_s30] sm:$0xf] (%p222_p0)  ;;  %p109_p1 = scmp.ge.s32.totalorder (%p222_p0), %s112_s28, 4  }
 0x13d   : > { %v353_v50 = vsel (%p222_p0), %vm296_vm11, %v342_v49, 0 }
 0x13e   : >> { %v298_v26 = vsel %vm296_vm11, %v292_v25, 0 }
 0x13f   : >> { %307 = vmatpush.bf16.msra.mxu1 %v298_v26 }
 0x142   : >> { %250 = vrot.lane.b32.xlu0 %v230_v57, %s808_s0 }
 0x143   : >> { %239 = vrot.lane.b32.xlu1 %v228_v58, %s808_s0 }
 0x1ac   : >> { %v247_v61 = vpop.permute.xlu0 %246 }
 0x1ad   : >> { %v236_v62 = vpop.permute.xlu1 %235 }
 0x1b4   : >> { %v251_v63 = vpop.permute.xlu0 %250 }
 0x1b5   : >> { %v240_v1 = vpop.permute.xlu1 %239  ;;  %v253_v5 = vsel %vm242_vm10, %v247_v61, %v251_v63 }
 0x1b6   : >> { %v258_v6 = vmul.f32 %v253_v5, %v914_v21  ;;  %v243_v7 = vsel %vm242_vm10, %v236_v62, %v240_v1 }
 0x1b7   : >> { %v255_v9 = vmul.f32 %v243_v7, %v914_v21 }
 0x1b8   : >> { %v259_v8 = vadd.f32 %v258_v6, %v257_v4 }
 0x1b9   : >> { %v256_v14 = vadd.f32 %v255_v9, %v254_v11 }
 0x1ba   : >> { %v261_v10 = vpack.c.bf16 %v259_v8, %v259_v8 }
 0x1bb   : >> { %v260_v15 = vpack.c.bf16 %v256_v14, %v256_v14 }
 0x1bc   : >> { %v266_v12 = vsel %vm149_vm9, %v261_v10, 0 }
 0x1bd   : >> { %275 = vmatpush.bf16.xpose.msra.mxu0 %v266_v12 }
 0x1c4   : >> { %653 = vmatmul.msk.bf16.vlgmr.msra.gmra.mxu0 %vm149_vm9, %v260_v15 }
 0x1c5   : > { %362 = vmatpush.bf16.msra.mxu0 (%p222_p0), %v353_v50 }
 0x241   : >> { %v277_v16 = vpop.f32.mrf.mxu0 }
 0x242   : >> { %v281_v19 = vsel %vm102_vm2, %v277_v16, -1e+30 }
 0x243   : >> { %v282_v22 = vsel %vm149_vm9, %v281_v19, -inf }
 0x244   : >> { %283 = vmax.xlane.f32.xlu2 %v282_v22 }
 0x249   : >> { %v279_v23 = vpop.f32.mrf.mxu0 }
 0x2b7   : >> { %v284_v27 = vpop.xlane.xlu2 %283 }
 0x2b8   : >> { %v285_v28 = vsub.f32 %v281_v19, %v284_v27 }
 0x2ba   : >> { %v286_v29 = vmul.f32 1.442695, %v285_v28 }
 0x2bc   : >> { %750 = vpow2.f32 %v286_v29 }
 0x2c2   : >> { %v751_v30 = vpop.eup %750 }
 0x2c3   : >> { %v288_v31 = vsel %vm149_vm9, %v751_v30, 0.0  ;;  %v291_v32 = vpack.c.bf16 %v751_v30, %v751_v30 }
 0x2c4   : >> { %289 = vadd.xlane.f32.xlu2 %v288_v31 }
 0x2c5   : >> { %654 = vmatmul.msk.bf16.vlgmr.msra.gmra.mxu1 %vm149_vm9, %v291_v32 }
 0x337   : >> { %v290_v33 = vpop.xlane.xlu2 %289 }
 0x338   : >> { %752 = vrcp.f32 %v290_v33  ;;  %v324_v37 = vand.u32 2147483648, %v290_v33  ;;  %v322_v40 = vand.u32 2147483647, %v290_v33  ;;  %vm318_vm13 = vweird.f32 %v290_v33 }
 0x33a   : >> { %v325_v42 = vor.u32 1.1754944e-38, %v324_v37  ;;  %vm323_vm15 = vcmp.eq.f32.partialorder %v322_v40, 8.507059e+37 }
 0x33e   : >> { %v753_v34 = vpop.eup %752 }
 0x33f   : >> { %v314_v35 = vmul.f32 %v753_v34, %v290_v33  ;;  %vm319_vm12 = vweird.f32 %v753_v34 }
 0x340   : >> { %vm320_vm14 = vmor %vm318_vm13, %vm319_vm12 }
 0x341   : >> { %v315_v36 = vsub.f32 1.0, %v314_v35 }
 0x342   : >> { %v309_v38 = vpop.f32.mrf.mxu1 }
 0x343   : >> { %v316_v39 = vmul.f32 %v753_v34, %v315_v36 }
 0x345   : >> { %v317_v41 = vadd.f32 %v753_v34, %v316_v39 }
 0x347   : >> { %v321_v43 = vsel %vm320_vm14, %v753_v34, %v317_v41 }
 0x348   : >> { %v326_v45 = vsel %vm323_vm15, %v325_v42, %v321_v43 }
 0x349   : >> { %v328_v46 = vmul.f32 %v326_v45, %v309_v38  ;;  %224 = sbr.rel (!%p222_p0) target bundleno = 309 (0x135), region = 98 }
 0x34a   : >> { %v311_v47 = vpop.f32.mrf.mxu1 }
 0x34b   : >> { %v329_v48 = vpack.c.bf16 %v328_v46, %v328_v46 }
 0x34d   : >> { %335 = vst.msk [vmem:[%s333_s10] sm:$0xf] %vm334_vm1, %v329_v48 }
 0x34e   :  { %424 = vst.msk [vmem:[#allocation9] sm:$0xff] (%p109_p1), %vm51_vm0, %v805_v2  ;;  %v712_v44 = vld [vmem:[%s1045_s7] sm:$0xff] (%p109_p1)  ;;  %vm421_vm5 = vcmask (%p109_p1), 257024   ;;  %v719_v33 = vld [vmem:[%s1047_s9 + $0x18] sm:$0xff] (%p109_p1)  ;;  %v718_v34 = vld [vmem:[%s1047_s9 + $0x10] sm:$0xff] (%p109_p1)  ;;  %s583_s25 = sshll.u32 (%p109_p1), %s1050_s12, 4  ;;  %s584_s25 = int_to_ptr.hbm [resolvable:$true] %s583_s25 }
 0x34f   :  { %425 = vst.msk [vmem:[#allocation9 + $0x8] sm:$0xff] (%p109_p1), %vm51_vm0, %v805_v2  ;;  %v713_v2 = vld [vmem:[%s1045_s7 + $0x8] sm:$0xff] (%p109_p1)  ;;  %v714_v1 = vld [vmem:[%s1046_s8] sm:$0xff] (%p109_p1)  ;;  %552 = vmatpush.bf16.msra.mxu2 (%p109_p1), %v719_v33  ;;  %s810_s26 = smov (%p109_p1), 128   ;;  %s811_s27 = smov (%p109_p1), 8  }
 0x350   :  { %v754_v16 = vld [vmem:[%s1044_s6] ss:$0 sm:$0xff] (%p109_p1)  ;;  %v717_v35 = vld [vmem:[%s1047_s9 + $0x8] sm:$0xff] (%p109_p1) }
 0x351   :  { %v716_v36 = vld [vmem:[%s1047_s9] sm:$0xff] (%p109_p1)  ;;  %s809_s9 = smov (%p109_p1), [#allocation10]  }
 0x352   :  { %s581_s23 = sshll.u32 (%p109_p1), %s809_s9, 4  ;;  %s582_s23 = int_to_ptr.vmem [resolvable:$true] %s581_s23 }
 0x353   :  { %553 = vmatpush.bf16.msra.mxu2 (%p109_p1), %v718_v34 }
 0x354   : > { %v710_v51 = vld [vmem:[#allocation5] sm:$0xff] }
 0x355   : > { %661 = vmatmul.msk.bf16.vlgmr.msra.gmra.mxu0 %vm149_vm9, %v710_v51  ;;  %vm544_vm9 = vcmask (%p109_p1), 523264  }
 0x356   :  { %459 = vmatpush.bf16.msra.mxu0 (%p109_p1), %v713_v2 }
 0x357   :  { %554 = vmatpush.bf16.msra.mxu2 (%p109_p1), %v717_v35 }
 0x35a   :  { %460 = vmatpush.bf16.msra.mxu0 (%p109_p1), %v712_v44 }
 0x35b   :  { %555 = vmatpush.bf16.msra.mxu2 (%p109_p1), %v716_v36 }
 0x3d2   : > { %v364_v53 = vpop.f32.mrf.mxu0 }
 0x3d3   : > { %v369_v54 = vadd.f32 %v364_v53, %v336_v52 }
 0x3d5   : > { %371 = vst.msk [vmem:[#allocation6] sm:$0xff] %vm51_vm0, %v369_v54 }
 0x3d9   :  { %111 = sbr.rel (!%p109_p1) target bundleno = 156 (0x9c), region = 109 }
 0x3da   : > { %v366_v56 = vpop.f32.mrf.mxu0 }
 0x3db   : > { %v370_v57 = vadd.f32 %v366_v56, %v337_v55  ;;  %v507_v55 = vld [vmem:[#allocation9] sm:$0xff] (%p109_p1) }
 0x3dc   :  { %v373_v58 = vld [vmem:[#allocation6] sm:$0xff] (%p109_p1) }
 0x3dd   : > { %372 = vst.msk [vmem:[#allocation6 + $0x8] sm:$0xff] %vm51_vm0, %v370_v57  ;;  %v375_v60 = vadd.f32 (%p109_p1), %v373_v58, %v880_v0  ;;  %v508_v58 = vld [vmem:[#allocation9 + $0x8] sm:$0xff] (%p109_p1) }
 0x3df   :  { %v379_v62 = vmul.f32 %v375_v60, %v375_v60  ;;  %377 = vst.msk [vmem:[#allocation7] sm:$0xff] %vm51_vm0, %v375_v60 }
 0x3e1   :  { %v381_v63 = vsel %vm51_vm0, %v379_v62, 0.0 }
 0x3e2   :  { %382 = vadd.xlane.f32.xlu0 %v381_v63 }
 0x3e4   :  { %v374_v59 = vld [vmem:[#allocation6 + $0x8] sm:$0xff] }
 0x3e5   :  { %v376_v61 = vadd.f32 %v374_v59, %v891_v3  ;;  %v715_v3 = vld [vmem:[%s1046_s8 + $0x8] sm:$0xff] }
 0x3e6   :  { %489 = vmatpush.bf16.msra.mxu1 %v715_v3 }
 0x3e7   :  { %378 = vst.msk [vmem:[#allocation7 + $0x8] sm:$0xff] %vm51_vm0, %v376_v61  ;;  %v380_v17 = vmul.f32 %v376_v61, %v376_v61 }
 0x3e9   :  { %v384_v18 = vsel %vm51_vm0, %v380_v17, 0.0 }
 0x3ea   :  { %385 = vadd.xlane.f32.xlu0 %v384_v18  ;;  %490 = vmatpush.bf16.msra.mxu1 %v714_v1 }
 0x3ee   :  { %v570_v17 = vld [vmem:[#allocation7 + $0x8] sm:$0xff] }
 0x455   :  { %v383_v20 = vpop.xlane.xlu0 %382 }
 0x456   :  { %v387_v0 = vmul.f32 %v383_v20, %v897_v13 }
 0x458   :  { %v389_v21 = vadd.f32 1e-05, %v387_v0 }
 0x45a   :  { %755 = vrsqrt.f32 %v389_v21  ;;  %vm397_vm3 = vweird.f32 %v389_v21 }
 0x45d   :  { %v386_v4 = vpop.xlane.xlu0 %385 }
 0x45e   :  { %v388_v5 = vmul.f32 %v386_v4, %v897_v13 }
 0x460   :  { %v756_v6 = vpop.eup %755  ;;  %v390_v7 = vadd.f32 1e-05, %v388_v5 }
 0x461   :  { %v392_v8 = vmul.f32 %v756_v6, %v389_v21  ;;  %vm398_vm2 = vweird.f32 %v756_v6 }
 0x462   :  { %757 = vrsqrt.f32 %v390_v7  ;;  %vm399_vm4 = vmor %vm397_vm3, %vm398_vm2  ;;  %vm407_vm7 = vweird.f32 %v390_v7 }
 0x463   :  { %v393_v9 = vmul.f32 %v756_v6, %v392_v8 }
 0x465   :  { %v394_v10 = vmul.f32 0.5, %v393_v9 }
 0x467   :  { %v395_v11 = vsub.f32 1.5, %v394_v10 }
 0x468   :  { %v758_v12 = vpop.eup %757 }
 0x469   :  { %v396_v14 = vmul.f32 %v756_v6, %v395_v11  ;;  %v402_v15 = vmul.f32 %v758_v12, %v390_v7  ;;  %vm408_vm6 = vweird.f32 %v758_v12 }
 0x46a   :  { %vm409_vm8 = vmor %vm407_vm7, %vm408_vm6 }
 0x46b   :  { %v400_v13 = vsel %vm399_vm4, %v756_v6, %v396_v14  ;;  %v403_v19 = vmul.f32 %v758_v12, %v402_v15 }
 0x46c   :  { %v411_v22 = vmul.f32 %v400_v13, %v375_v60  ;;  %v569_v60 = vld [vmem:[#allocation7] sm:$0xff] }
 0x46d   :  { %v404_v23 = vmul.f32 0.5, %v403_v19 }
 0x46e   :  { %v417_v24 = vmul.f32 %v754_v16, %v411_v22 }
 0x46f   :  { %v405_v25 = vsub.f32 1.5, %v404_v23 }
 0x470   :  { %v419_v26 = vpack.c.bf16 %v417_v24, %v417_v24 }
 0x471   :  { %v406_v27 = vmul.f32 %v758_v12, %v405_v25 }
 0x472   :  { %422 = vst.msk [vmem:[#allocation8] sm:$0xf] %vm421_vm5, %v419_v26 }
 0x473   :  { %v410_v28 = vsel %vm409_vm8, %v758_v12, %v406_v27 }
 0x474   :  { %v412_v29 = vmul.f32 %v410_v28, %v376_v61 }
 0x476   :  { %v418_v30 = vmul.f32 %v754_v16, %v412_v29 }
 0x478   :  { %v420_v31 = vpack.c.bf16 %v418_v30, %v418_v30 }
 0x47a   :  { %423 = vst.msk [vmem:[#allocation8 + $0x4] sm:$0xf] %vm421_vm5, %v420_v31 }
 0x481   :  { %v711_v32 = vld [vmem:[#allocation8] sm:$0xff] }
 0x482   :  { %674 = vmatmul.msk.bf16.vlgmr.msra.gmra.mxu0 %vm51_vm0, %v711_v32  ;;  %683 = vmatmul.msk.bf16.vlgmr.msra.gmra.mxu1 %vm51_vm0, %v711_v32 }
 0x4ff   :  { %v462_v37 = vpop.f32.mrf.mxu0  ;;  %v492_v43 = vpop.f32.mrf.mxu1 }
 0x500   :  { %v497_v38 = vmul.f32 0.5, %v462_v37 }
 0x502   :  { %759 = vtanh.f32 %v497_v38 }
 0x507   :  { %v464_v39 = vpop.f32.mrf.mxu0  ;;  %v494_v51 = vpop.f32.mrf.mxu1 }
 0x508   :  { %v760_v40 = vpop.eup %759  ;;  %v498_v41 = vmul.f32 0.5, %v464_v39 }
 0x509   :  { %v501_v42 = vadd.f32 1.0, %v760_v40 }
 0x50a   :  { %761 = vtanh.f32 %v498_v41 }
 0x50b   :  { %v503_v45 = vmul.f32 0.5, %v501_v42 }
 0x50d   :  { %v505_v48 = vmul.f32 %v503_v45, %v462_v37 }
 0x50f   :  { %v509_v52 = vmul.f32 %v505_v48, %v492_v43 }
 0x510   :  { %v762_v46 = vpop.eup %761 }
 0x511   :  { %v502_v47 = vadd.f32 1.0, %v762_v46 }
 0x513   :  { %v504_v49 = vmul.f32 0.5, %v502_v47 }
 0x515   :  { %v506_v50 = vmul.f32 %v504_v49, %v464_v39 }
 0x517   :  { %v510_v53 = vmul.f32 %v506_v50, %v494_v51 }
 0x519   :  { %v511_v54 = vpack.c.bf16 %v510_v53, %v509_v52 }
 0x51b   :  { %700 = vmatmul.msk.bf16.vlgmr.msra.gmra.mxu2 %vm544_vm9, %v511_v54 }
 0x59e   :  { %v557_v56 = vpop.f32.mrf.mxu2 }
 0x59f   :  { %v562_v57 = vadd.f32 %v557_v56, %v507_v55 }
 0x5a1   :  { %564 = vst.msk [vmem:[#allocation9] sm:$0xff] %vm51_vm0, %v562_v57 }
 0x5a6   :  { %v559_v59 = vpop.f32.mrf.mxu2 }
 0x5a7   :  { %v563_v61 = vadd.f32 %v559_v59, %v508_v58 }
 0x5a8   :  { %v571_v62 = vld [vmem:[#allocation9] sm:$0xff] }
 0x5a9   :  { %565 = vst.msk [vmem:[#allocation9 + $0x8] sm:$0xff] %vm51_vm0, %v563_v61  ;;  %v573_v63 = vadd.f32 %v571_v62, %v569_v60 }
 0x5ab   :  { %575 = vst.msk [vmem:[#allocation10] sm:$0xff] %vm51_vm0, %v573_v63 }
 0x5b0   :  { %v572_v18 = vld [vmem:[#allocation9 + $0x8] sm:$0xff] }
 0x5b1   :  { %v574_v20 = vadd.f32 %v572_v18, %v570_v17 }
 0x5b3   :  { %576 = vst.msk [vmem:[#allocation10 + $0x8] sm:$0xff] %vm51_vm0, %v574_v20 }
 0x5b4   :  { %589 = dma.vmem_to_hbm [thread:$0]  %s582_s23, 256, %s584_s25, [#allocation11], %s810_s26, %s810_s26, %s811_s27  }
 0x5b5   :  { %795 = dma.done.wait [#allocation11], 256  }
 0x5b6   :  { %796 = vsyncadd [#allocation11], 4294967040 }
 0x5b7   :  { %594 = vsyncpa [#allocation11], 1 }

// kernel: tpu_custom_call.1
= control target key start
LH: loop header
LB: loop body
LE: loop exit
PB: predicated region body
PF: predicated region fallthrough
CT: control target
= control target key end

     0   :  { %vm51_vm0 = vcmask 261120   ;;  %v805_v2 = vmov 0.0   ;;  %s1038_s0 = inlined_call_operand.vmem [shape: f32[2,8,32], index: 0, kind: input, shape index: {}]   ;;  %s1039_s1 = inlined_call_operand.vmem [shape: f32[1,32], index: 1, kind: input, shape index: {}]   ;;  %s1040_s2 = inlined_call_operand.vmem [shape: bf16[4,32,8], index: 2, kind: input, shape index: {}]   ;;  %s1041_s3 = inlined_call_operand.vmem [shape: bf16[4,32,8], index: 3, kind: input, shape index: {}]   ;;  %s1042_s4 = inlined_call_operand.vmem [shape: bf16[4,32,8], index: 4, kind: input, shape index: {}]   ;;  %s1043_s5 = inlined_call_operand.vmem [shape: bf16[4,8,32], index: 5, kind: input, shape index: {}]   ;;  %s1044_s6 = inlined_call_operand.vmem [shape: f32[1,32], index: 6, kind: input, shape index: {}]   ;;  %s1045_s7 = inlined_call_operand.vmem [shape: bf16[32,64], index: 7, kind: input, shape index: {}]   ;;  %s1046_s8 = inlined_call_operand.vmem [shape: bf16[32,64], index: 8, kind: input, shape index: {}]   ;;  %s1047_s9 = inlined_call_operand.vmem [shape: bf16[64,32], index: 9, kind: input, shape index: {}]   ;;  %s1048_s10 = inlined_call_operand.vmem [shape: f32[1,8,8], index: 10, kind: input, shape index: {}]   ;;  %s1049_s11 = inlined_call_operand.vmem [shape: f32[1,8,8], index: 11, kind: input, shape index: {}]   ;;  %s1050_s12 = inlined_call_operand.hbm [shape: f32[2,8,32], index: 12, kind: output, shape index: {}]  }
   0x1   :  { %v880_v0 = vld [vmem:[%s1038_s0] sm:$0xff]  ;;  %105 = vst.msk [vmem:[#allocation6] sm:$0xff] %vm51_vm0, %v805_v2  ;;  %v891_v3 = vld [vmem:[%s1038_s0 + $0x8] sm:$0xff] }
   0x2   :  { %v49_v1 = vmul.f32 %v880_v0, %v880_v0  ;;  %106 = vst.msk [vmem:[#allocation6 + $0x8] sm:$0xff] %vm51_vm0, %v805_v2 }
   0x3   :  { %17 = vsyncpa [#allocation11], 0  ;;  %v50_v5 = vmul.f32 %v891_v3, %v891_v3  ;;  %v806_v7 = vmov 32.0   ;;  %v98_v14 = vlaneseq  ;;  %v909_v20 = vld [vmem:[%s1048_s10] sm:$0xff]  ;;  %s924_s28 = smov 0  }
   0x4   :  { %v52_v4 = vsel %vm51_vm0, %v49_v1, 0.0  ;;  %744 = vrcp.f32 %v806_v7  ;;  %v914_v21 = vld [vmem:[%s1049_s11] sm:$0xff] }
   0x5   :  { %53 = vadd.xlane.f32.xlu0 %v52_v4  ;;  %v55_v6 = vsel %vm51_vm0, %v50_v5, 0.0  ;;  %v900_v17 = vshrl.u32 %v98_v14, 7  ;;  %v902_v18 = vand.u32 127, %v98_v14  ;;  %v743_v38 = vld [vmem:[%s1039_s1] ss:$0 sm:$0xff] }
   0x7   :  { %vm102_vm2 = vcmp.ge.s32.totalorder %v900_v17, %v902_v18 }
   0xa   :  { %v745_v8 = vpop.eup %744 }
   0xb   :  { %v59_v9 = vmul.f32 32.0, %v745_v8  ;;  %vm63_vm1 = vweird.f32 %v745_v8 }
   0xd   :  { %56 = vadd.xlane.f32.xlu0 %v55_v6  ;;  %v60_v10 = vsub.f32 1.0, %v59_v9 }
   0xf   :  { %v61_v11 = vmul.f32 %v745_v8, %v60_v10 }
  0x11   :  { %v62_v12 = vadd.f32 %v745_v8, %v61_v11 }
  0x13   :  { %v897_v13 = vsel %vm63_vm1, %v745_v8, %v62_v12 }
  0x78   :  { %v54_v15 = vpop.xlane.xlu0 %53 }
  0x79   :  { %v65_v16 = vmul.f32 %v897_v13, %v54_v15 }
  0x7b   :  { %v67_v19 = vadd.f32 1e-05, %v65_v16 }
  0x7d   :  { %746 = vrsqrt.f32 %v67_v19  ;;  %vm75_vm4 = vweird.f32 %v67_v19 }
  0x80   :  { %v57_v22 = vpop.xlane.xlu0 %56 }
  0x81   :  { %v66_v23 = vmul.f32 %v897_v13, %v57_v22 }
  0x83   :  { %v747_v24 = vpop.eup %746  ;;  %v68_v25 = vadd.f32 1e-05, %v66_v23 }
  0x84   :  { %v70_v26 = vmul.f32 %v747_v24, %v67_v19  ;;  %vm76_vm3 = vweird.f32 %v747_v24 }
  0x85   :  { %748 = vrsqrt.f32 %v68_v25  ;;  %vm77_vm5 = vmor %vm75_vm4, %vm76_vm3  ;;  %vm85_vm7 = vweird.f32 %v68_v25 }
  0x86   :  { %v71_v27 = vmul.f32 %v747_v24, %v70_v26 }
  0x88   :  { %v72_v28 = vmul.f32 0.5, %v71_v27 }
  0x8a   :  { %v73_v29 = vsub.f32 1.5, %v72_v28 }
  0x8b   :  { %v749_v30 = vpop.eup %748 }
  0x8c   :  { %v80_v31 = vmul.f32 %v749_v30, %v68_v25  ;;  %v74_v32 = vmul.f32 %v747_v24, %v73_v29  ;;  %vm86_vm6 = vweird.f32 %v749_v30 }
  0x8d   :  { %vm87_vm8 = vmor %vm85_vm7, %vm86_vm6 }
  0x8e   :  { %v81_v33 = vmul.f32 %v749_v30, %v80_v31  ;;  %v78_v35 = vsel %vm77_vm5, %v747_v24, %v74_v32 }
  0x8f   :  { %v89_v39 = vmul.f32 %v78_v35, %v880_v0 }
  0x90   :  { %v82_v34 = vmul.f32 0.5, %v81_v33 }
  0x91   :  { %v95_v42 = vmul.f32 %v743_v38, %v89_v39 }
  0x92   :  { %v83_v36 = vsub.f32 1.5, %v82_v34 }
  0x94   :  { %v84_v37 = vmul.f32 %v749_v30, %v83_v36 }
  0x96   :  { %v88_v40 = vsel %vm87_vm8, %v749_v30, %v84_v37 }
  0x97   :  { %v90_v41 = vmul.f32 %v88_v40, %v891_v3 }
  0x99   :  { %v96_v43 = vmul.f32 %v743_v38, %v90_v41 }
  0x9b   :  { %v922_v44 = vpack.c.bf16 %v96_v43, %v95_v42 }
  0x9c LB: > { %s701_s29 = sshll.u32 %s799_s28, 4  ;;  %vm149_vm9 = vcmask 64512   ;;  %s951_s20 = smov 0   ;;  %s799_s28 = sphi %s924_s28, %s112_s28  }
  0x9d   : > { %s115_s13 = scalar_lea.vmem %s1040_s2, %s701_s29  ;;  %s153_s16 = scalar_lea.vmem %s1041_s3, %s701_s29 }
  0x9e   : > { %v703_v45 = vld [vmem:[%s115_s13 + $0x8] sm:$0xff]  ;;  %s187_s19 = scalar_lea.vmem %s1042_s4, %s701_s29  ;;  %v702_v48 = vld [vmem:[%s115_s13] sm:$0xff] }
  0x9f   : > { %v706_v46 = vld [vmem:[%s153_s16 + $0x8] sm:$0xff]  ;;  %141 = vmatpush.bf16.msra.mxu0 %v703_v45  ;;  %v705_v49 = vld [vmem:[%s153_s16] sm:$0xff] }
  0xa0   : > { %v709_v47 = vld [vmem:[%s187_s19 + $0x8] sm:$0xff]  ;;  %176 = vmatpush.bf16.msra.mxu1 %v706_v46  ;;  %v708_v50 = vld [vmem:[%s187_s19] sm:$0xff] }
  0xa1   : > { %210 = vmatpush.bf16.msra.mxu2 %v709_v47 }
  0xa3   : > { %142 = vmatpush.bf16.msra.mxu0 %v702_v48 }
  0xa4   : > { %177 = vmatpush.bf16.msra.mxu1 %v705_v49 }
  0xa5   : > { %211 = vmatpush.bf16.msra.mxu2 %v708_v50 }
  0xa6   : > { %631 = vmatmul.msk.bf16.vlgmr.msra.gmra.mxu0 %vm51_vm0, %v922_v44 }
  0xa7   : > { %641 = vmatmul.msk.bf16.vlgmr.msra.gmra.mxu1 %vm51_vm0, %v922_v44 }
  0xa8   : > { %651 = vmatmul.msk.bf16.vlgmr.msra.gmra.mxu2 %vm51_vm0, %v922_v44 }
 0x123   : > { %v144_v51 = vpop.f32.mrf.mxu0 }
 0x124   : > { %v179_v52 = vpop.f32.mrf.mxu1  ;;  %150 = vst.msk [vmem:[#allocation2] sm:$0xff] %vm149_vm9, %v144_v51 }
 0x125   : > { %184 = vst.msk [vmem:[#allocation3] sm:$0xff] %vm149_vm9, %v179_v52 }
 0x12b   : > { %v213_v53 = vpop.f32.mrf.mxu2  ;;  %v146_v54 = vpop.f32.mrf.mxu0 }
 0x12c   : > { %218 = vst.msk [vmem:[#allocation4] sm:$0xff] %vm149_vm9, %v213_v53  ;;  %v181_v55 = vpop.f32.mrf.mxu1 }
 0x12d   : > { %151 = vst.msk [vmem:[#allocation2 + $0x8] sm:$0xff] %vm149_vm9, %v146_v54 }
 0x12e   : > { %185 = vst.msk [vmem:[#allocation3 + $0x8] sm:$0xff] %vm149_vm9, %v181_v55 }
 0x133   : > { %v215_v56 = vpop.f32.mrf.mxu2 }
 0x134   : > { %219 = vst.msk [vmem:[#allocation4 + $0x8] sm:$0xff] %vm149_vm9, %v215_v56 }
 0x135 LB: >> { %s957_s21 = sshll.u32 %s803_s20, 3  ;;  %s807_s24 = smov 124   ;;  %vm242_vm10 = vcmask 31744   ;;  %vm296_vm11 = vcmask 1043456   ;;  %vm334_vm1 = vcmask 60416   ;;  %s803_s20 = sphi %s951_s20, %s225_s20  }
 0x136   : >> { %s229_s22 = scalar_lea.vmem [#allocation3], %s957_s21  ;;  %s227_s23 = scalar_lea.vmem [#allocation2], %s957_s21 }
 0x137   : >> { %v230_v57 = vld [vmem:[%s229_s22] sm:$0xff]  ;;  %s808_s0 = smov 4   ;;  %s231_s25 = scalar_lea.vmem [#allocation4], %s957_s21 }
 0x138   : >> { %v228_v58 = vld [vmem:[%s227_s23] sm:$0xff]  ;;  %v244_v59 = vsub.f32 0.0, %v230_v57  ;;  %v257_v4 = vmul.f32 %v230_v57, %v909_v20  ;;  %s330_s26 = sshra.s32 %s957_s21, 3  ;;  %s225_s20 = sadd.s32 1, %s803_s20  }
 0x139   : >> { %v233_v60 = vsub.f32 0.0, %v228_v58  ;;  %v254_v11 = vmul.f32 %v228_v58, %v909_v20  ;;  %s655_s27 = sshll.u32 %s330_s26, 2  ;;  %p222_p0 = scmp.ge.s32.totalorder %s225_s20, 2  }
 0x13a   : >> { %246 = vrot.lane.b32.xlu0 %v244_v59, %s807_s24  ;;  %s333_s10 = scalar_lea.vmem [#allocation5], %s655_s27  ;;  %s656_s11 = sshll.u32 (%p222_p0), %s799_s28, 2  ;;  %v336_v52 = vld [vmem:[#allocation6] sm:$0xff] (%p222_p0)  ;;  %v337_v55 = vld [vmem:[#allocation6 + $0x8] sm:$0xff] (%p222_p0) }
 0x13b   : >> { %235 = vrot.lane.b32.xlu1 %v233_v60, %s807_s24  ;;  %v232_v24 = vld [vmem:[%s231_s25] sm:$0xff]  ;;  %s341_s30 = scalar_lea.vmem (%p222_p0), %s1043_s5, %s656_s11  ;;  %s112_s28 = sadd.s32 (%p222_p0), 1, %s799_s28  }
 0x13c   : >> { %v292_v25 = vpack.c.bf16 %v232_v24, %v232_v24  ;;  %v342_v49 = vld [vmem:[%s341_s30] sm:$0xf] (%p222_p0)  ;;  %p109_p1 = scmp.ge.s32.totalorder (%p222_p0), %s112_s28, 4  }
 0x13d   : > { %v353_v50 = vsel (%p222_p0), %vm296_vm11, %v342_v49, 0 }
 0x13e   : >> { %v298_v26 = vsel %vm296_vm11, %v292_v25, 0 }
 0x13f   : >> { %307 = vmatpush.bf16.msra.mxu1 %v298_v26 }
 0x142   : >> { %250 = vrot.lane.b32.xlu0 %v230_v57, %s808_s0 }
 0x143   : >> { %239 = vrot.lane.b32.xlu1 %v228_v58, %s808_s0 }
 0x1ac   : >> { %v247_v61 = vpop.permute.xlu0 %246 }
 0x1ad   : >> { %v236_v62 = vpop.permute.xlu1 %235 }
 0x1b4   : >> { %v251_v63 = vpop.permute.xlu0 %250 }
 0x1b5   : >> { %v240_v1 = vpop.permute.xlu1 %239  ;;  %v253_v5 = vsel %vm242_vm10, %v247_v61, %v251_v63 }
 0x1b6   : >> { %v258_v6 = vmul.f32 %v253_v5, %v914_v21  ;;  %v243_v7 = vsel %vm242_vm10, %v236_v62, %v240_v1 }
 0x1b7   : >> { %v255_v9 = vmul.f32 %v243_v7, %v914_v21 }
 0x1b8   : >> { %v259_v8 = vadd.f32 %v258_v6, %v257_v4 }
 0x1b9   : >> { %v256_v14 = vadd.f32 %v255_v9, %v254_v11 }
 0x1ba   : >> { %v261_v10 = vpack.c.bf16 %v259_v8, %v259_v8 }
 0x1bb   : >> { %v260_v15 = vpack.c.bf16 %v256_v14, %v256_v14 }
 0x1bc   : >> { %v266_v12 = vsel %vm149_vm9, %v261_v10, 0 }
 0x1bd   : >> { %275 = vmatpush.bf16.xpose.msra.mxu0 %v266_v12 }
 0x1c4   : >> { %653 = vmatmul.msk.bf16.vlgmr.msra.gmra.mxu0 %vm149_vm9, %v260_v15 }
 0x1c5   : > { %362 = vmatpush.bf16.msra.mxu0 (%p222_p0), %v353_v50 }
 0x241   : >> { %v277_v16 = vpop.f32.mrf.mxu0 }
 0x242   : >> { %v281_v19 = vsel %vm102_vm2, %v277_v16, -1e+30 }
 0x243   : >> { %v282_v22 = vsel %vm149_vm9, %v281_v19, -inf }
 0x244   : >> { %283 = vmax.xlane.f32.xlu2 %v282_v22 }
 0x249   : >> { %v279_v23 = vpop.f32.mrf.mxu0 }
 0x2b7   : >> { %v284_v27 = vpop.xlane.xlu2 %283 }
 0x2b8   : >> { %v285_v28 = vsub.f32 %v281_v19, %v284_v27 }
 0x2ba   : >> { %v286_v29 = vmul.f32 1.442695, %v285_v28 }
 0x2bc   : >> { %750 = vpow2.f32 %v286_v29 }
 0x2c2   : >> { %v751_v30 = vpop.eup %750 }
 0x2c3   : >> { %v288_v31 = vsel %vm149_vm9, %v751_v30, 0.0  ;;  %v291_v32 = vpack.c.bf16 %v751_v30, %v751_v30 }
 0x2c4   : >> { %289 = vadd.xlane.f32.xlu2 %v288_v31 }
 0x2c5   : >> { %654 = vmatmul.msk.bf16.vlgmr.msra.gmra.mxu1 %vm149_vm9, %v291_v32 }
 0x337   : >> { %v290_v33 = vpop.xlane.xlu2 %289 }
 0x338   : >> { %752 = vrcp.f32 %v290_v33  ;;  %v324_v37 = vand.u32 2147483648, %v290_v33  ;;  %v322_v40 = vand.u32 2147483647, %v290_v33  ;;  %vm318_vm13 = vweird.f32 %v290_v33 }
 0x33a   : >> { %v325_v42 = vor.u32 1.1754944e-38, %v324_v37  ;;  %vm323_vm15 = vcmp.eq.f32.partialorder %v322_v40, 8.507059e+37 }
 0x33e   : >> { %v753_v34 = vpop.eup %752 }
 0x33f   : >> { %v314_v35 = vmul.f32 %v753_v34, %v290_v33  ;;  %vm319_vm12 = vweird.f32 %v753_v34 }
 0x340   : >> { %vm320_vm14 = vmor %vm318_vm13, %vm319_vm12 }
 0x341   : >> { %v315_v36 = vsub.f32 1.0, %v314_v35 }
 0x342   : >> { %v309_v38 = vpop.f32.mrf.mxu1 }
 0x343   : >> { %v316_v39 = vmul.f32 %v753_v34, %v315_v36 }
 0x345   : >> { %v317_v41 = vadd.f32 %v753_v34, %v316_v39 }
 0x347   : >> { %v321_v43 = vsel %vm320_vm14, %v753_v34, %v317_v41 }
 0x348   : >> { %v326_v45 = vsel %vm323_vm15, %v325_v42, %v321_v43 }
 0x349   : >> { %v328_v46 = vmul.f32 %v326_v45, %v309_v38  ;;  %224 = sbr.rel (!%p222_p0) target bundleno = 309 (0x135), region = 98 }
 0x34a   : >> { %v311_v47 = vpop.f32.mrf.mxu1 }
 0x34b   : >> { %v329_v48 = vpack.c.bf16 %v328_v46, %v328_v46 }
 0x34d   : >> { %335 = vst.msk [vmem:[%s333_s10] sm:$0xf] %vm334_vm1, %v329_v48 }
 0x34e   :  { %424 = vst.msk [vmem:[#allocation9] sm:$0xff] (%p109_p1), %vm51_vm0, %v805_v2  ;;  %v712_v44 = vld [vmem:[%s1045_s7] sm:$0xff] (%p109_p1)  ;;  %vm421_vm5 = vcmask (%p109_p1), 257024   ;;  %v719_v33 = vld [vmem:[%s1047_s9 + $0x18] sm:$0xff] (%p109_p1)  ;;  %v718_v34 = vld [vmem:[%s1047_s9 + $0x10] sm:$0xff] (%p109_p1)  ;;  %s583_s25 = sshll.u32 (%p109_p1), %s1050_s12, 4  ;;  %s584_s25 = int_to_ptr.hbm [resolvable:$true] %s583_s25 }
 0x34f   :  { %425 = vst.msk [vmem:[#allocation9 + $0x8] sm:$0xff] (%p109_p1), %vm51_vm0, %v805_v2  ;;  %v713_v2 = vld [vmem:[%s1045_s7 + $0x8] sm:$0xff] (%p109_p1)  ;;  %v714_v1 = vld [vmem:[%s1046_s8] sm:$0xff] (%p109_p1)  ;;  %552 = vmatpush.bf16.msra.mxu2 (%p109_p1), %v719_v33  ;;  %s810_s26 = smov (%p109_p1), 128   ;;  %s811_s27 = smov (%p109_p1), 8  }
 0x350   :  { %v754_v16 = vld [vmem:[%s1044_s6] ss:$0 sm:$0xff] (%p109_p1)  ;;  %v717_v35 = vld [vmem:[%s1047_s9 + $0x8] sm:$0xff] (%p109_p1) }
 0x351   :  { %v716_v36 = vld [vmem:[%s1047_s9] sm:$0xff] (%p109_p1)  ;;  %s809_s9 = smov (%p109_p1), [#allocation10]  }
 0x352   :  { %s581_s23 = sshll.u32 (%p109_p1), %s809_s9, 4  ;;  %s582_s23 = int_to_ptr.vmem [resolvable:$true] %s581_s23 }
 0x353   :  { %553 = vmatpush.bf16.msra.mxu2 (%p109_p1), %v718_v34 }
 0x354   : > { %v710_v51 = vld [vmem:[#allocation5] sm:$0xff] }
 0x355   : > { %661 = vmatmul.msk.bf16.vlgmr.msra.gmra.mxu0 %vm149_vm9, %v710_v51  ;;  %vm544_vm9 = vcmask (%p109_p1), 523264  }
 0x356   :  { %459 = vmatpush.bf16.msra.mxu0 (%p109_p1), %v713_v2 }
 0x357   :  { %554 = vmatpush.bf16.msra.mxu2 (%p109_p1), %v717_v35 }
 0x35a   :  { %460 = vmatpush.bf16.msra.mxu0 (%p109_p1), %v712_v44 }
 0x35b   :  { %555 = vmatpush.bf16.msra.mxu2 (%p109_p1), %v716_v36 }
 0x3d2   : > { %v364_v53 = vpop.f32.mrf.mxu0 }
 0x3d3   : > { %v369_v54 = vadd.f32 %v364_v53, %v336_v52 }
 0x3d5   : > { %371 = vst.msk [vmem:[#allocation6] sm:$0xff] %vm51_vm0, %v369_v54 }
 0x3d9   :  { %111 = sbr.rel (!%p109_p1) target bundleno = 156 (0x9c), region = 109 }
 0x3da   : > { %v366_v56 = vpop.f32.mrf.mxu0 }
 0x3db   : > { %v370_v57 = vadd.f32 %v366_v56, %v337_v55  ;;  %v507_v55 = vld [vmem:[#allocation9] sm:$0xff] (%p109_p1) }
 0x3dc   :  { %v373_v58 = vld [vmem:[#allocation6] sm:$0xff] (%p109_p1) }
 0x3dd   : > { %372 = vst.msk [vmem:[#allocation6 + $0x8] sm:$0xff] %vm51_vm0, %v370_v57  ;;  %v375_v60 = vadd.f32 (%p109_p1), %v373_v58, %v880_v0  ;;  %v508_v58 = vld [vmem:[#allocation9 + $0x8] sm:$0xff] (%p109_p1) }
 0x3df   :  { %v379_v62 = vmul.f32 %v375_v60, %v375_v60  ;;  %377 = vst.msk [vmem:[#allocation7] sm:$0xff] %vm51_vm0, %v375_v60 }
 0x3e1   :  { %v381_v63 = vsel %vm51_vm0, %v379_v62, 0.0 }
 0x3e2   :  { %382 = vadd.xlane.f32.xlu0 %v381_v63 }
 0x3e4   :  { %v374_v59 = vld [vmem:[#allocation6 + $0x8] sm:$0xff] }
 0x3e5   :  { %v376_v61 = vadd.f32 %v374_v59, %v891_v3  ;;  %v715_v3 = vld [vmem:[%s1046_s8 + $0x8] sm:$0xff] }
 0x3e6   :  { %489 = vmatpush.bf16.msra.mxu1 %v715_v3 }
 0x3e7   :  { %378 = vst.msk [vmem:[#allocation7 + $0x8] sm:$0xff] %vm51_vm0, %v376_v61  ;;  %v380_v17 = vmul.f32 %v376_v61, %v376_v61 }
 0x3e9   :  { %v384_v18 = vsel %vm51_vm0, %v380_v17, 0.0 }
 0x3ea   :  { %385 = vadd.xlane.f32.xlu0 %v384_v18  ;;  %490 = vmatpush.bf16.msra.mxu1 %v714_v1 }
 0x3ee   :  { %v570_v17 = vld [vmem:[#allocation7 + $0x8] sm:$0xff] }
 0x455   :  { %v383_v20 = vpop.xlane.xlu0 %382 }
 0x456   :  { %v387_v0 = vmul.f32 %v383_v20, %v897_v13 }
 0x458   :  { %v389_v21 = vadd.f32 1e-05, %v387_v0 }
 0x45a   :  { %755 = vrsqrt.f32 %v389_v21  ;;  %vm397_vm3 = vweird.f32 %v389_v21 }
 0x45d   :  { %v386_v4 = vpop.xlane.xlu0 %385 }
 0x45e   :  { %v388_v5 = vmul.f32 %v386_v4, %v897_v13 }
 0x460   :  { %v756_v6 = vpop.eup %755  ;;  %v390_v7 = vadd.f32 1e-05, %v388_v5 }
 0x461   :  { %v392_v8 = vmul.f32 %v756_v6, %v389_v21  ;;  %vm398_vm2 = vweird.f32 %v756_v6 }
 0x462   :  { %757 = vrsqrt.f32 %v390_v7  ;;  %vm399_vm4 = vmor %vm397_vm3, %vm398_vm2  ;;  %vm407_vm7 = vweird.f32 %v390_v7 }
 0x463   :  { %v393_v9 = vmul.f32 %v756_v6, %v392_v8 }
 0x465   :  { %v394_v10 = vmul.f32 0.5, %v393_v9 }
 0x467   :  { %v395_v11 = vsub.f32 1.5, %v394_v10 }
 0x468   :  { %v758_v12 = vpop.eup %757 }
 0x469   :  { %v396_v14 = vmul.f32 %v756_v6, %v395_v11  ;;  %v402_v15 = vmul.f32 %v758_v12, %v390_v7  ;;  %vm408_vm6 = vweird.f32 %v758_v12 }
 0x46a   :  { %vm409_vm8 = vmor %vm407_vm7, %vm408_vm6 }
 0x46b   :  { %v400_v13 = vsel %vm399_vm4, %v756_v6, %v396_v14  ;;  %v403_v19 = vmul.f32 %v758_v12, %v402_v15 }
 0x46c   :  { %v411_v22 = vmul.f32 %v400_v13, %v375_v60  ;;  %v569_v60 = vld [vmem:[#allocation7] sm:$0xff] }
 0x46d   :  { %v404_v23 = vmul.f32 0.5, %v403_v19 }
 0x46e   :  { %v417_v24 = vmul.f32 %v754_v16, %v411_v22 }
 0x46f   :  { %v405_v25 = vsub.f32 1.5, %v404_v23 }
 0x470   :  { %v419_v26 = vpack.c.bf16 %v417_v24, %v417_v24 }
 0x471   :  { %v406_v27 = vmul.f32 %v758_v12, %v405_v25 }
 0x472   :  { %422 = vst.msk [vmem:[#allocation8] sm:$0xf] %vm421_vm5, %v419_v26 }
 0x473   :  { %v410_v28 = vsel %vm409_vm8, %v758_v12, %v406_v27 }
 0x474   :  { %v412_v29 = vmul.f32 %v410_v28, %v376_v61 }
 0x476   :  { %v418_v30 = vmul.f32 %v754_v16, %v412_v29 }
 0x478   :  { %v420_v31 = vpack.c.bf16 %v418_v30, %v418_v30 }
 0x47a   :  { %423 = vst.msk [vmem:[#allocation8 + $0x4] sm:$0xf] %vm421_vm5, %v420_v31 }
 0x481   :  { %v711_v32 = vld [vmem:[#allocation8] sm:$0xff] }
 0x482   :  { %674 = vmatmul.msk.bf16.vlgmr.msra.gmra.mxu0 %vm51_vm0, %v711_v32  ;;  %683 = vmatmul.msk.bf16.vlgmr.msra.gmra.mxu1 %vm51_vm0, %v711_v32 }
 0x4ff   :  { %v462_v37 = vpop.f32.mrf.mxu0  ;;  %v492_v43 = vpop.f32.mrf.mxu1 }
 0x500   :  { %v497_v38 = vmul.f32 0.5, %v462_v37 }
 0x502   :  { %759 = vtanh.f32 %v497_v38 }
 0x507   :  { %v464_v39 = vpop.f32.mrf.mxu0  ;;  %v494_v51 = vpop.f32.mrf.mxu1 }
 0x508   :  { %v760_v40 = vpop.eup %759  ;;  %v498_v41 = vmul.f32 0.5, %v464_v39 }
 0x509   :  { %v501_v42 = vadd.f32 1.0, %v760_v40 }
 0x50a   :  { %761 = vtanh.f32 %v498_v41 }
 0x50b   :  { %v503_v45 = vmul.f32 0.5, %v501_v42 }
 0x50d   :  { %v505_v48 = vmul.f32 %v503_v45, %v462_v37 }
 0x50f   :  { %v509_v52 = vmul.f32 %v505_v48, %v492_v43 }
 0x510   :  { %v762_v46 = vpop.eup %761 }
 0x511   :  { %v502_v47 = vadd.f32 1.0, %v762_v46 }
 0x513   :  { %v504_v49 = vmul.f32 0.5, %v502_v47 }
 0x515   :  { %v506_v50 = vmul.f32 %v504_v49, %v464_v39 }
 0x517   :  { %v510_v53 = vmul.f32 %v506_v50, %v494_v51 }
 0x519   :  { %v511_v54 = vpack.c.bf16 %v510_v53, %v509_v52 }
 0x51b   :  { %700 = vmatmul.msk.bf16.vlgmr.msra.gmra.mxu2 %vm544_vm9, %v511_v54 }
 0x59e   :  { %v557_v56 = vpop.f32.mrf.mxu2 }
 0x59f   :  { %v562_v57 = vadd.f32 %v557_v56, %v507_v55 }
 0x5a1   :  { %564 = vst.msk [vmem:[#allocation9] sm:$0xff] %vm51_vm0, %v562_v57 }
 0x5a6   :  { %v559_v59 = vpop.f32.mrf.mxu2 }
 0x5a7   :  { %v563_v61 = vadd.f32 %v559_v59, %v508_v58 }
 0x5a8   :  { %v571_v62 = vld [vmem:[#allocation9] sm:$0xff] }
 0x5a9   :  { %565 = vst.msk [vmem:[#allocation9 + $0x8] sm:$0xff] %vm51_vm0, %v563_v61  ;;  %v573_v63 = vadd.f32 %v571_v62, %v569_v60 }
 0x5ab   :  { %575 = vst.msk [vmem:[#allocation10] sm:$0xff] %vm51_vm0, %v573_v63 }
 0x5b0   :  { %v572_v18 = vld [vmem:[#allocation9 + $0x8] sm:$0xff] }
 0x5b1   :  { %v574_v20 = vadd.f32 %v572_v18, %v570_v17 }
 0x5b3   :  { %576 = vst.msk [vmem:[#allocation10 + $0x8] sm:$0xff] %vm51_vm0, %v574_v20 }
 0x5b4   :  { %589 = dma.vmem_to_hbm [thread:$0]  %s582_s23, 256, %s584_s25, [#allocation11], %s810_s26, %s810_s26, %s811_s27  }
 0x5b5   :  { %795 = dma.done.wait [#allocation11], 256  }
 0x5b6   :  { %796 = vsyncadd [#allocation11], 4294967040 }
 0x5b7   :  { %594 = vsyncpa [#allocation11], 1 }

</bundles_post_ra>
